<compile_context>
chip_gen: v7x
topology: tpu7x:2x2x1
jax: 0.10.0
libtpu: 0.0.40
codegen_flags: <defaults>
</compile_context>

<pallas_src>
import math
import functools

import jax
import jax.numpy as jnp
from jax.experimental import pallas as pl
from jax.experimental.pallas import tpu as pltpu

LN_EPS = 1e-5


# ---------------------------------------------------------------------------
# Shared per-layer compute (pure function of values)
# ---------------------------------------------------------------------------
def _layernorm_f32(x, gamma, beta):
    mu = jnp.mean(x, axis=-1, keepdims=True)
    var = jnp.mean((x - mu) ** 2, axis=-1, keepdims=True)
    return (x - mu) * jax.lax.rsqrt(var + LN_EPS) * gamma + beta


def _layer_forward(x, wqkv, wo, w1, w2, pd, b1, *, num_heads, tb):
    """One post-norm TransformerEncoderLayer on a (tb*S, D) f32 activation.

    pd: (9, D) packed rows [bq, bk, bv, bo, g1, be1, b2, g2, be2]; b1: (1, F).
    """
    M, D = x.shape
    S = M // tb
    H = num_heads
    Dh = D // H
    scale = 1.0 / math.sqrt(Dh)

    bq, bk, bv = pd[0:1], pd[1:2], pd[2:3]
    bo, g1, be1 = pd[3:4], pd[4:5], pd[5:6]
    b2, g2, be2 = pd[6:7], pd[7:8], pd[8:9]

    xb = x.astype(jnp.bfloat16)

    # --- fused QKV projection: one bf16 MXU matmul, f32 accumulation ---
    qkv = jnp.dot(xb, wqkv, preferred_element_type=jnp.float32)        # (M, 3D)

    def split_heads(m):                         # (M, D) -> (tb*H, S, Dh)
        m = jnp.transpose(m.reshape(M, H, Dh), (1, 0, 2))              # (H, M, Dh)
        return m.reshape(H * tb, S, Dh)         # fold batch block into the head batch

    # Softmax scale folded into q (cheap (M,D) multiply instead of (.,S,S)).
    q = split_heads((qkv[:, 0 * D:1 * D] + bq) * scale).astype(jnp.bfloat16)
    k = split_heads(qkv[:, 1 * D:2 * D] + bk).astype(jnp.bfloat16)
    v = split_heads(qkv[:, 2 * D:3 * D] + bv).astype(jnp.bfloat16)

    # --- (tb*H)-batched attention; each (batch-row, head) attends only within S ---
    # TODO(synk): flash-style K-chunk loop for very long S (keeps only an (.,S,Tk) tile).
    s = jnp.einsum('hqd,hkd->hqk', q, k, preferred_element_type=jnp.float32)
    s = s - jnp.max(s, axis=-1, keepdims=True)
    p = jnp.exp(s)
    p = (p * pl.reciprocal(jnp.sum(p, axis=-1, keepdims=True), approx=True)
         ).astype(jnp.bfloat16)                                         # bf16 probs
    ctx = jnp.einsum('hqk,hkd->hqd', p, v,
                     preferred_element_type=jnp.float32)                # (tb*H, S, Dh)

    attn = jnp.transpose(ctx.reshape(H, M, Dh), (1, 0, 2)).reshape(M, D)
    attn = jnp.dot(attn.astype(jnp.bfloat16), wo,
                   preferred_element_type=jnp.float32) + bo

    # --- residual + LayerNorm1 (f32) ---
    y = _layernorm_f32(x + attn, g1, be1)

    # --- feed-forward: drop to bf16 right after the ReLU to halve the (M,F) temp ---
    h = jnp.dot(y.astype(jnp.bfloat16), w1, preferred_element_type=jnp.float32) + b1
    h = jnp.maximum(h, 0.0).astype(jnp.bfloat16)
    h = jnp.dot(h, w2, preferred_element_type=jnp.float32) + b2

    # --- residual + LayerNorm2 (f32) ---
    return _layernorm_f32(y + h, g2, be2)


# ---------------------------------------------------------------------------
# Kernel bodies
# ---------------------------------------------------------------------------
def _encoder_stream_kernel(x_ref, wqkv_ref, wo_ref, w1_ref, w2_ref,
                           pd_ref, pf_ref, fin_ref, o_ref, act_ref,
                           *, num_heads, tb, has_final_norm):
    """grid = (batch_blocks, layers); per-layer weights streamed per grid step.

    act_ref (VMEM f32) carries the activation across the (inner, 'arbitrary')
    layer axis, so there is no HBM round trip between layers."""
    layer = pl.program_id(1)
    last = pl.num_programs(1) - 1
    Tb, S, D = x_ref.shape

    @pl.when(layer == 0)
    def _():
        act_ref[...] = x_ref[...].reshape(Tb * S, D).astype(jnp.float32)

    z = _layer_forward(act_ref[...],
                       wqkv_ref[0], wo_ref[0], w1_ref[0], w2_ref[0],
                       pd_ref[0], pf_ref[0],
                       num_heads=num_heads, tb=tb)
    act_ref[...] = z

    @pl.when(layer == last)
    def _():
        out = z
        if has_final_norm:
            fin = fin_ref[...]
            out = _layernorm_f32(out, fin[0:1], fin[1:2])
        o_ref[...] = out.reshape(Tb, S, D).astype(o_ref.dtype)


def _encoder_resident_kernel(x_ref, wqkv_ref, wo_ref, w1_ref, w2_ref,
                             pd_ref, pf_ref, fin_ref, o_ref,
                             *, num_heads, tb, num_layers, has_final_norm):
    """grid = (batch_blocks,); the whole weight stack is resident in VMEM and the
    layer loop runs inside the kernel -> no per-layer pipeline/DMA overhead."""
    Tb, S, D = x_ref.shape
    x0 = x_ref[...].reshape(Tb * S, D).astype(jnp.float32)

    def body(l, x):
        return _layer_forward(x,
                              wqkv_ref[l], wo_ref[l], w1_ref[l], w2_ref[l],
                              pd_ref[l], pf_ref[l],
                              num_heads=num_heads, tb=tb)

    z = jax.lax.fori_loop(0, num_layers, body, x0, unroll=(num_layers <= 4))
    if has_final_norm:
        fin = fin_ref[...]
        z = _layernorm_f32(z, fin[0:1], fin[1:2])
    o_ref[...] = z.reshape(Tb, S, D).astype(o_ref.dtype)


# ---------------------------------------------------------------------------
# Sizing helpers (generation-aware)
# ---------------------------------------------------------------------------
def _vmem_capacity_bytes():
    try:
        info = pltpu.get_tpu_info()
        cap = int(getattr(info, "vmem_capacity_bytes", 0) or 0)
        if cap > 0:
            return cap
    except Exception:
        pass
    return 64 * 1024 * 1024          # conservative (v7x-sized) fallback


def _block_vmem_bytes(tb, S, D, H, F):
    """Rough per-block live-bytes estimate used to bound the batch block."""
    M = tb * S
    act = 4 * M * D                                  # f32 activation carry
    proj = 4 * M * 3 * D + 3 * 2 * M * D             # f32 qkv + bf16 q/k/v
    attn = (4 + 2) * tb * H * S * S + 4 * M * D      # f32 scores + bf16 probs + ctx
    ffn = (4 + 2) * M * F                            # f32 then bf16 FFN hidden
    io = 2 * 2 * 4 * tb * S * D                      # double-buffered x / out blocks
    return act + proj + attn + ffn + io


def _choose_batch_block(B, S, D, H, F, resident, vmem_limit):
    divisors = [d for d in range(1, B + 1) if B % d == 0]
    target = max(1, -(-256 // S))                    # Tb*S >= 256 fills a 256-wide MXU
    tb = max([d for d in divisors if d <= target] or [1])
    if resident and B >= 2:
        # Weights are not re-streamed, so prefer >=2 batch blocks (v7x megacore
        # "parallel" axis) over a bigger MXU M-dim.
        tb = min(tb, max([d for d in divisors if B // d >= 2] or [1]))
    while tb > 1 and _block_vmem_bytes(tb, S, D, H, F) > vmem_limit // 2:
        tb = max([d for d in divisors if d < tb] or [1])
    return tb


# ---------------------------------------------------------------------------
# Parameter stacking / packing
# ---------------------------------------------------------------------------
def _stack_layer_params(layer_params):
    wqkv = jnp.stack([p["wqkv"] for p in layer_params]).astype(jnp.bfloat16)  # (L,D,3D)
    wo = jnp.stack([p["wo"] for p in layer_params]).astype(jnp.bfloat16)      # (L,D,D)
    w1 = jnp.stack([p["w1"] for p in layer_params]).astype(jnp.bfloat16)      # (L,D,F)
    w2 = jnp.stack([p["w2"] for p in layer_params]).astype(jnp.bfloat16)      # (L,F,D)
    D = wqkv.shape[1]

    # Pack the nine (D,)-sized per-layer bias / LayerNorm vectors into one
    # lane-dense (L, 9, D) tensor: one DMA per layer instead of 9 tiny descriptors.
    def rows(p):
        bqkv = p["bqkv"].reshape(3, D)
        return jnp.stack([bqkv[0], bqkv[1], bqkv[2],
                          p["bo"].reshape(D), p["g1"].reshape(D), p["be1"].reshape(D),
                          p["b2"].reshape(D), p["g2"].reshape(D), p["be2"].reshape(D)], 0)

    pack_d = jnp.stack([rows(p) for p in layer_params]).astype(jnp.float32)   # (L,9,D)
    pack_f = jnp.stack([p["b1"].reshape(1, -1)
                        for p in layer_params]).astype(jnp.float32)           # (L,1,F)
    return wqkv, wo, w1, w2, pack_d, pack_f


# ---------------------------------------------------------------------------
# Public forward
# ---------------------------------------------------------------------------
def transformer_encoder_forward(src_sbd, layer_params, final_norm, num_heads,
                                force_streaming=False):
    """src_sbd: (S, B, D) seq-first (PyTorch default). Returns (S, B, D)."""
    S, B, D = src_sbd.shape
    L = len(layer_params)
    F = layer_params[0]["w1"].shape[1]
    assert D % num_heads == 0

    x = jnp.transpose(src_sbd, (1, 0, 2))            # -> (B, S, D), one transpose total

    wqkv, wo, w1, w2, pack_d, pack_f = _stack_layer_params(layer_params)
    if final_norm is not None:
        fin = jnp.concatenate([final_norm["gamma"].reshape(1, D),
                               final_norm["beta"].reshape(1, D)], 0).astype(jnp.float32)
        has_final_norm = True
    else:
        fin = jnp.concatenate([jnp.ones((1, D), jnp.float32),
                               jnp.zeros((1, D), jnp.float32)], 0)
        has_final_norm = False

    weights = (wqkv, wo, w1, w2, pack_d, pack_f)
    weight_bytes = sum(int(a.size) * a.dtype.itemsize for a in weights) + int(fin.size) * 4

    vmem_cap = _vmem_capacity_bytes()
    vmem_limit = int(vmem_cap * 7 // 8)              # generation-aware, not hard-coded

    # Small weight stacks live fully in VMEM (no per-layer streaming); big stacks
    # are streamed per (batch-block, layer) grid step.
    resident = (not force_streaming) and (weight_bytes <= vmem_limit // 4)

    tb = _choose_batch_block(B, S, D, num_heads, F, resident, vmem_limit)
    nb = B // tb

    # Advisory cost estimate (weights are re-streamed once per batch block).
    flops = 2 * L * B * S * (4 * D * D + 2 * D * F + 2 * S * D)
    transcendentals = L * B * num_heads * S * S + 2 * L * B * S
    bytes_accessed = (2 * B * S * D * x.dtype.itemsize
                      + weight_bytes * (1 if resident else nb))
    cost = pl.CostEstimate(flops=int(flops), transcendentals=int(transcendentals),
                           bytes_accessed=int(bytes_accessed))

    if resident:
        kernel = functools.partial(_encoder_resident_kernel, num_heads=num_heads,
                                   tb=tb, num_layers=L, has_final_norm=has_final_norm)
        amap = lambda b: (b, 0, 0)
        wmap = lambda b: (0, 0, 0)
        fmap = lambda b: (0, 0)
        in_specs = [
            pl.BlockSpec((tb, S, D), amap),          # x
            pl.BlockSpec((L, D, 3 * D), wmap),       # wqkv  (bf16, resident)
            pl.BlockSpec((L, D, D), wmap),           # wo
            pl.BlockSpec((L, D, F), wmap),           # w1
            pl.BlockSpec((L, F, D), wmap),           # w2
            pl.BlockSpec((L, 9, D), wmap),           # packed D-sized biases / LN params
            pl.BlockSpec((L, 1, F), wmap),           # packed F-sized bias (b1)
            pl.BlockSpec((2, D), fmap),              # final-norm gamma/beta
        ]
        out_spec = pl.BlockSpec((tb, S, D), amap)
        grid = (nb,)
        scratch = []
        dims = ("parallel",)
    else:
        kernel = functools.partial(_encoder_stream_kernel, num_heads=num_heads,
                                   tb=tb, has_final_norm=has_final_norm)
        amap = lambda b, l: (b, 0, 0)
        lmap = lambda b, l: (l, 0, 0)
        fmap = lambda b, l: (0, 0)
        in_specs = [
            pl.BlockSpec((tb, S, D), amap),          # x (same block across layer axis)
            pl.BlockSpec((1, D, 3 * D), lmap),       # per-layer wqkv (streamed)
            pl.BlockSpec((1, D, D), lmap),           # wo
            pl.BlockSpec((1, D, F), lmap),           # w1
            pl.BlockSpec((1, F, D), lmap),           # w2
            pl.BlockSpec((1, 9, D), lmap),           # packed D-sized biases / LN params
            pl.BlockSpec((1, 1, F), lmap),           # packed F-sized bias (b1)
            pl.BlockSpec((2, D), fmap),              # final-norm gamma/beta
        ]
        out_spec = pl.BlockSpec((tb, S, D), amap)
        grid = (nb, L)
        scratch = [pltpu.VMEM((tb * S, D), jnp.float32)]   # activation carry
        dims = ("parallel", "arbitrary")

    out_bsd = pl.pallas_call(
        kernel,
        out_shape=jax.ShapeDtypeStruct((B, S, D), x.dtype),
        grid=grid,
        in_specs=in_specs,
        out_specs=out_spec,
        scratch_shapes=scratch,
        compiler_params=pltpu.CompilerParams(
            dimension_semantics=dims,
            vmem_limit_bytes=vmem_limit),
        cost_estimate=cost,
    )(x, wqkv, wo, w1, w2, pack_d, pack_f, fin)

    return jnp.transpose(out_bsd, (1, 0, 2))         # -> (S, B, D)


# ---------------------------------------------------------------------------
# Deterministic parameter initialization
# ---------------------------------------------------------------------------
def init_layer_params(key, d_model, dim_ff):
    ks = jax.random.split(key, 4)
    sc = 0.05
    return {
        "wqkv": sc * jax.random.normal(ks[0], (d_model, 3 * d_model), jnp.float32),
        "bqkv": jnp.zeros((1, 3 * d_model), jnp.float32),
        "wo":   sc * jax.random.normal(ks[1], (d_model, d_model), jnp.float32),
        "bo":   jnp.zeros((1, d_model), jnp.float32),
        "g1":   jnp.ones((1, d_model), jnp.float32),
        "be1":  jnp.zeros((1, d_model), jnp.float32),
        "w1":   sc * jax.random.normal(ks[2], (d_model, dim_ff), jnp.float32),
        "b1":   jnp.zeros((1, dim_ff), jnp.float32),
        "w2":   sc * jax.random.normal(ks[3], (dim_ff, d_model), jnp.float32),
        "b2":   jnp.zeros((1, d_model), jnp.float32),
        "g2":   jnp.ones((1, d_model), jnp.float32),
        "be2":  jnp.zeros((1, d_model), jnp.float32),
    }


if __name__ == "__main__":
    S, B, D = 8, 2, 32          # seq, batch, d_model
    H = 4                       # num heads
    F = 64                      # feed-forward dim
    L = 2                       # num layers

    root = jax.random.PRNGKey(0)
    k_src, *k_layers = jax.random.split(root, 1 + L)

    src = jax.random.normal(k_src, (S, B, D), jnp.float32)
    layer_params = [init_layer_params(k, D, F) for k in k_layers]
    final_norm = {"gamma": jnp.ones((1, D), jnp.float32),
                  "beta": jnp.zeros((1, D), jnp.float32)}

    # Small demo weights -> the VMEM-resident (no per-layer streaming) path.
    out_res = jax.block_until_ready(
        transformer_encoder_forward(src, layer_params, final_norm, num_heads=H))

    # Also exercise the weight-streaming path with a batch block (Tb > 1).
    out_str = jax.block_until_ready(
        transformer_encoder_forward(src, layer_params, final_norm, num_heads=H,
                                    force_streaming=True))

    assert out_res.shape == (S, B, D), out_res.shape
    assert jnp.all(jnp.isfinite(out_res))
    assert jnp.allclose(out_res, out_str, atol=5e-3, rtol=5e-3), \
        float(jnp.max(jnp.abs(out_res - out_str)))
    print("KERNEL_OK")
</pallas_src>

<mosaic_0001>
module attributes {stable_mosaic.version = 11 : i64} {
  func.func @_encoder_resident_kernel(%arg0: i32, %arg1: memref<1x8x32xf32, #tpu.memory_space<vmem>>, %arg2: memref<2x32x96xbf16, #tpu.memory_space<vmem>>, %arg3: memref<2x32x32xbf16, #tpu.memory_space<vmem>>, %arg4: memref<2x32x64xbf16, #tpu.memory_space<vmem>>, %arg5: memref<2x64x32xbf16, #tpu.memory_space<vmem>>, %arg6: memref<2x9x32xf32, #tpu.memory_space<vmem>>, %arg7: memref<2x1x64xf32, #tpu.memory_space<vmem>>, %arg8: memref<2x32xf32, #tpu.memory_space<vmem>>, %arg9: memref<1x8x32xf32, #tpu.memory_space<vmem>>) attributes {dimension_semantics = [#tpu.dimension_semantics<parallel>], iteration_bounds = array<i64: 2>, scalar_prefetch = 0 : i64, scratch_operands = 0 : i64, tpu.core_type = #tpu.core_type<tc>, window_params = [{transform_indices = @transform_0, window_bounds = array<i64: 1, 8, 32>}, {pipeline_mode = #tpu.pipeline_mode<synchronous>, transform_indices = @transform_1, window_bounds = array<i64: 2, 32, 96>}, {pipeline_mode = #tpu.pipeline_mode<synchronous>, transform_indices = @transform_2, window_bounds = array<i64: 2, 32, 32>}, {pipeline_mode = #tpu.pipeline_mode<synchronous>, transform_indices = @transform_3, window_bounds = array<i64: 2, 32, 64>}, {pipeline_mode = #tpu.pipeline_mode<synchronous>, transform_indices = @transform_4, window_bounds = array<i64: 2, 64, 32>}, {pipeline_mode = #tpu.pipeline_mode<synchronous>, transform_indices = @transform_5, window_bounds = array<i64: 2, 9, 32>}, {pipeline_mode = #tpu.pipeline_mode<synchronous>, transform_indices = @transform_6, window_bounds = array<i64: 2, 1, 64>}, {pipeline_mode = #tpu.pipeline_mode<synchronous>, transform_indices = @transform_7, window_bounds = array<i64: 2, 32>}, {transform_indices = @transform_8, window_bounds = array<i64: 1, 8, 32>}]} {
    %c0 = arith.constant 0 : index
    %c0_0 = arith.constant 0 : index
    %c0_1 = arith.constant 0 : index
    %0 = vector.load %arg1[%c0, %c0_0, %c0_1] : memref<1x8x32xf32, #tpu.memory_space<vmem>>, vector<1x8x32xf32>
    %1 = vector.shape_cast %0 : vector<1x8x32xf32> to vector<8x32xf32>
    %c0_i32 = arith.constant 0 : i32
    %2 = arith.index_cast %c0_i32 : i32 to index
    %c0_2 = arith.constant 0 : index
    %c0_3 = arith.constant 0 : index
    %3 = vector.load %arg2[%2, %c0_2, %c0_3] : memref<2x32x96xbf16, #tpu.memory_space<vmem>>, vector<1x32x96xbf16>
    %4 = vector.shape_cast %3 : vector<1x32x96xbf16> to vector<32x96xbf16>
    %5 = arith.index_cast %c0_i32 : i32 to index
    %c0_4 = arith.constant 0 : index
    %c0_5 = arith.constant 0 : index
    %6 = vector.load %arg3[%5, %c0_4, %c0_5] : memref<2x32x32xbf16, #tpu.memory_space<vmem>>, vector<1x32x32xbf16>
    %7 = vector.shape_cast %6 : vector<1x32x32xbf16> to vector<32x32xbf16>
    %8 = arith.index_cast %c0_i32 : i32 to index
    %c0_6 = arith.constant 0 : index
    %c0_7 = arith.constant 0 : index
    %9 = vector.load %arg4[%8, %c0_6, %c0_7] : memref<2x32x64xbf16, #tpu.memory_space<vmem>>, vector<1x32x64xbf16>
    %10 = vector.shape_cast %9 : vector<1x32x64xbf16> to vector<32x64xbf16>
    %11 = arith.index_cast %c0_i32 : i32 to index
    %c0_8 = arith.constant 0 : index
    %c0_9 = arith.constant 0 : index
    %12 = vector.load %arg5[%11, %c0_8, %c0_9] : memref<2x64x32xbf16, #tpu.memory_space<vmem>>, vector<1x64x32xbf16>
    %13 = vector.shape_cast %12 : vector<1x64x32xbf16> to vector<64x32xbf16>
    %14 = arith.index_cast %c0_i32 : i32 to index
    %c0_10 = arith.constant 0 : index
    %c0_11 = arith.constant 0 : index
    %15 = vector.load %arg6[%14, %c0_10, %c0_11] : memref<2x9x32xf32, #tpu.memory_space<vmem>>, vector<1x9x32xf32>
    %16 = vector.shape_cast %15 : vector<1x9x32xf32> to vector<9x32xf32>
    %17 = arith.index_cast %c0_i32 : i32 to index
    %c0_12 = arith.constant 0 : index
    %c0_13 = arith.constant 0 : index
    %18 = vector.load %arg7[%17, %c0_12, %c0_13] : memref<2x1x64xf32, #tpu.memory_space<vmem>>, vector<1x1x64xf32>
    %19 = vector.shape_cast %18 : vector<1x1x64xf32> to vector<1x64xf32>
    %20 = vector.extract_strided_slice %16 {offsets = [0, 0], sizes = [1, 32], strides = [1, 1]} : vector<9x32xf32> to vector<1x32xf32>
    %21 = vector.extract_strided_slice %16 {offsets = [1, 0], sizes = [1, 32], strides = [1, 1]} : vector<9x32xf32> to vector<1x32xf32>
    %22 = vector.extract_strided_slice %16 {offsets = [2, 0], sizes = [1, 32], strides = [1, 1]} : vector<9x32xf32> to vector<1x32xf32>
    %23 = vector.extract_strided_slice %16 {offsets = [3, 0], sizes = [1, 32], strides = [1, 1]} : vector<9x32xf32> to vector<1x32xf32>
    %24 = vector.extract_strided_slice %16 {offsets = [4, 0], sizes = [1, 32], strides = [1, 1]} : vector<9x32xf32> to vector<1x32xf32>
    %25 = vector.extract_strided_slice %16 {offsets = [5, 0], sizes = [1, 32], strides = [1, 1]} : vector<9x32xf32> to vector<1x32xf32>
    %26 = vector.extract_strided_slice %16 {offsets = [6, 0], sizes = [1, 32], strides = [1, 1]} : vector<9x32xf32> to vector<1x32xf32>
    %27 = vector.extract_strided_slice %16 {offsets = [7, 0], sizes = [1, 32], strides = [1, 1]} : vector<9x32xf32> to vector<1x32xf32>
    %28 = vector.extract_strided_slice %16 {offsets = [8, 0], sizes = [1, 32], strides = [1, 1]} : vector<9x32xf32> to vector<1x32xf32>
    %29 = arith.truncf %1 : vector<8x32xf32> to vector<8x32xbf16>
    %cst = arith.constant dense<0.000000e+00> : vector<8x96xf32>
    %30 = tpu.matmul %29, %4, %cst {dimension_numbers = #tpu.dot_dimension_numbers<[1], [0], [0], [1], [0, 0, 1, 1], [], []>} : vector<8x32xbf16>, vector<32x96xbf16>, vector<8x96xf32> -> vector<8x96xf32>
    %31 = vector.extract_strided_slice %30 {offsets = [0, 0], sizes = [8, 32], strides = [1, 1]} : vector<8x96xf32> to vector<8x32xf32>
    %32 = vector.broadcast %20 : vector<1x32xf32> to vector<8x32xf32>
    %33 = arith.addf %31, %32 : vector<8x32xf32>
    %cst_14 = arith.constant 0.353553385 : f32
    %34 = vector.broadcast %cst_14 : f32 to vector<8x32xf32>
    %35 = arith.mulf %33, %34 : vector<8x32xf32>
    %36 = vector.shape_cast %35 : vector<8x32xf32> to vector<8x4x8xf32>
    %37 = tpu.transpose %36, [1, 0, 2] : vector<8x4x8xf32> -> vector<4x8x8xf32>
    %38 = arith.truncf %37 : vector<4x8x8xf32> to vector<4x8x8xbf16>
    %39 = vector.extract_strided_slice %30 {offsets = [0, 32], sizes = [8, 32], strides = [1, 1]} : vector<8x96xf32> to vector<8x32xf32>
    %40 = vector.broadcast %21 : vector<1x32xf32> to vector<8x32xf32>
    %41 = arith.addf %39, %40 : vector<8x32xf32>
    %42 = vector.shape_cast %41 : vector<8x32xf32> to vector<8x4x8xf32>
    %43 = tpu.transpose %42, [1, 0, 2] : vector<8x4x8xf32> -> vector<4x8x8xf32>
    %44 = arith.truncf %43 : vector<4x8x8xf32> to vector<4x8x8xbf16>
    %45 = vector.extract_strided_slice %30 {offsets = [0, 64], sizes = [8, 32], strides = [1, 1]} : vector<8x96xf32> to vector<8x32xf32>
    %46 = vector.broadcast %22 : vector<1x32xf32> to vector<8x32xf32>
    %47 = arith.addf %45, %46 : vector<8x32xf32>
    %48 = vector.shape_cast %47 : vector<8x32xf32> to vector<8x4x8xf32>
    %49 = tpu.transpose %48, [1, 0, 2] : vector<8x4x8xf32> -> vector<4x8x8xf32>
    %50 = arith.truncf %49 : vector<4x8x8xf32> to vector<4x8x8xbf16>
    "tpu.trace_start"() <{level = 10 : i32, message = "hqd,hkd->hqk"}> : () -> ()
    %cst_15 = arith.constant dense<0.000000e+00> : vector<4x8x8xf32>
    %51 = tpu.matmul %38, %44, %cst_15 {dimension_numbers = #tpu.dot_dimension_numbers<[2], [2], [1], [1], [0, 0, 0, 1, 1, 1], [0], [0]>} : vector<4x8x8xbf16>, vector<4x8x8xbf16>, vector<4x8x8xf32> -> vector<4x8x8xf32>
    "tpu.trace_stop"() : () -> ()
    %cst_16 = arith.constant dense<0xFF800000> : vector<4x8xf32>
    %52 = vector.multi_reduction <maximumf>, %51, %cst_16 [2] : vector<4x8x8xf32> to vector<4x8xf32>
    %53 = vector.shape_cast %52 : vector<4x8xf32> to vector<4x8x1xf32>
    %54 = vector.broadcast %53 : vector<4x8x1xf32> to vector<4x8x8xf32>
    %55 = arith.subf %51, %54 : vector<4x8x8xf32>
    %56 = math.exp %55 : vector<4x8x8xf32>
    %cst_17 = arith.constant dense<0.000000e+00> : vector<4x8xf32>
    %57 = vector.multi_reduction <add>, %56, %cst_17 [2] : vector<4x8x8xf32> to vector<4x8xf32>
    %58 = vector.shape_cast %57 : vector<4x8xf32> to vector<4x8x1xf32>
    %59 = tpu.reciprocal %58 {approx = true} : vector<4x8x1xf32> -> vector<4x8x1xf32>
    %60 = vector.broadcast %59 : vector<4x8x1xf32> to vector<4x8x8xf32>
    %61 = arith.mulf %56, %60 : vector<4x8x8xf32>
    %62 = arith.truncf %61 : vector<4x8x8xf32> to vector<4x8x8xbf16>
    "tpu.trace_start"() <{level = 10 : i32, message = "hqk,hkd->hqd"}> : () -> ()
    %cst_18 = arith.constant dense<0.000000e+00> : vector<4x8x8xf32>
    %63 = tpu.matmul %62, %50, %cst_18 {dimension_numbers = #tpu.dot_dimension_numbers<[2], [1], [1], [2], [0, 0, 0, 1, 1, 2], [0], [0]>} : vector<4x8x8xbf16>, vector<4x8x8xbf16>, vector<4x8x8xf32> -> vector<4x8x8xf32>
    "tpu.trace_stop"() : () -> ()
    %64 = tpu.transpose %63, [1, 0, 2] : vector<4x8x8xf32> -> vector<8x4x8xf32>
    %65 = vector.shape_cast %64 : vector<8x4x8xf32> to vector<8x32xf32>
    %66 = arith.truncf %65 : vector<8x32xf32> to vector<8x32xbf16>
    %cst_19 = arith.constant dense<0.000000e+00> : vector<8x32xf32>
    %67 = tpu.matmul %66, %7, %cst_19 {dimension_numbers = #tpu.dot_dimension_numbers<[1], [0], [0], [1], [0, 0, 1, 1], [], []>} : vector<8x32xbf16>, vector<32x32xbf16>, vector<8x32xf32> -> vector<8x32xf32>
    %68 = vector.broadcast %23 : vector<1x32xf32> to vector<8x32xf32>
    %69 = arith.addf %67, %68 : vector<8x32xf32>
    %70 = arith.addf %1, %69 : vector<8x32xf32>
    %cst_20 = arith.constant dense<0.000000e+00> : vector<8xf32>
    %71 = vector.multi_reduction <add>, %70, %cst_20 [1] : vector<8x32xf32> to vector<8xf32>
    %72 = vector.shape_cast %71 : vector<8xf32> to vector<8x1xf32>
    %cst_21 = arith.constant 3.200000e+01 : f32
    %73 = vector.broadcast %cst_21 : f32 to vector<8x1xf32>
    %74 = arith.divf %72, %73 : vector<8x1xf32>
    %75 = vector.broadcast %74 : vector<8x1xf32> to vector<8x32xf32>
    %76 = arith.subf %70, %75 : vector<8x32xf32>
    %77 = arith.mulf %76, %76 : vector<8x32xf32>
    %cst_22 = arith.constant dense<0.000000e+00> : vector<8xf32>
    %78 = vector.multi_reduction <add>, %77, %cst_22 [1] : vector<8x32xf32> to vector<8xf32>
    %79 = vector.shape_cast %78 : vector<8xf32> to vector<8x1xf32>
    %cst_23 = arith.constant 3.200000e+01 : f32
    %80 = vector.broadcast %cst_23 : f32 to vector<8x1xf32>
    %81 = arith.divf %79, %80 : vector<8x1xf32>
    %82 = vector.broadcast %74 : vector<8x1xf32> to vector<8x32xf32>
    %83 = arith.subf %70, %82 : vector<8x32xf32>
    %cst_24 = arith.constant 9.99999974E-6 : f32
    %84 = vector.broadcast %cst_24 : f32 to vector<8x1xf32>
    %85 = arith.addf %81, %84 : vector<8x1xf32>
    %86 = math.rsqrt %85 : vector<8x1xf32>
    %87 = vector.broadcast %86 : vector<8x1xf32> to vector<8x32xf32>
    %88 = arith.mulf %83, %87 : vector<8x32xf32>
    %89 = vector.broadcast %24 : vector<1x32xf32> to vector<8x32xf32>
    %90 = arith.mulf %88, %89 : vector<8x32xf32>
    %91 = vector.broadcast %25 : vector<1x32xf32> to vector<8x32xf32>
    %92 = arith.addf %90, %91 : vector<8x32xf32>
    %93 = arith.truncf %92 : vector<8x32xf32> to vector<8x32xbf16>
    %cst_25 = arith.constant dense<0.000000e+00> : vector<8x64xf32>
    %94 = tpu.matmul %93, %10, %cst_25 {dimension_numbers = #tpu.dot_dimension_numbers<[1], [0], [0], [1], [0, 0, 1, 1], [], []>} : vector<8x32xbf16>, vector<32x64xbf16>, vector<8x64xf32> -> vector<8x64xf32>
    %95 = vector.broadcast %19 : vector<1x64xf32> to vector<8x64xf32>
    %96 = arith.addf %94, %95 : vector<8x64xf32>
    %cst_26 = arith.constant 0.000000e+00 : f32
    %97 = vector.broadcast %cst_26 : f32 to vector<8x64xf32>
    %98 = arith.maximumf %96, %97 : vector<8x64xf32>
    %99 = arith.truncf %98 : vector<8x64xf32> to vector<8x64xbf16>
    %cst_27 = arith.constant dense<0.000000e+00> : vector<8x32xf32>
    %100 = tpu.matmul %99, %13, %cst_27 {dimension_numbers = #tpu.dot_dimension_numbers<[1], [0], [0], [1], [0, 0, 1, 1], [], []>} : vector<8x64xbf16>, vector<64x32xbf16>, vector<8x32xf32> -> vector<8x32xf32>
    %101 = vector.broadcast %26 : vector<1x32xf32> to vector<8x32xf32>
    %102 = arith.addf %100, %101 : vector<8x32xf32>
    %103 = arith.addf %92, %102 : vector<8x32xf32>
    %cst_28 = arith.constant dense<0.000000e+00> : vector<8xf32>
    %104 = vector.multi_reduction <add>, %103, %cst_28 [1] : vector<8x32xf32> to vector<8xf32>
    %105 = vector.shape_cast %104 : vector<8xf32> to vector<8x1xf32>
    %cst_29 = arith.constant 3.200000e+01 : f32
    %106 = vector.broadcast %cst_29 : f32 to vector<8x1xf32>
    %107 = arith.divf %105, %106 : vector<8x1xf32>
    %108 = vector.broadcast %107 : vector<8x1xf32> to vector<8x32xf32>
    %109 = arith.subf %103, %108 : vector<8x32xf32>
    %110 = arith.mulf %109, %109 : vector<8x32xf32>
    %cst_30 = arith.constant dense<0.000000e+00> : vector<8xf32>
    %111 = vector.multi_reduction <add>, %110, %cst_30 [1] : vector<8x32xf32> to vector<8xf32>
    %112 = vector.shape_cast %111 : vector<8xf32> to vector<8x1xf32>
    %cst_31 = arith.constant 3.200000e+01 : f32
    %113 = vector.broadcast %cst_31 : f32 to vector<8x1xf32>
    %114 = arith.divf %112, %113 : vector<8x1xf32>
    %115 = vector.broadcast %107 : vector<8x1xf32> to vector<8x32xf32>
    %116 = arith.subf %103, %115 : vector<8x32xf32>
    %cst_32 = arith.constant 9.99999974E-6 : f32
    %117 = vector.broadcast %cst_32 : f32 to vector<8x1xf32>
    %118 = arith.addf %114, %117 : vector<8x1xf32>
    %119 = math.rsqrt %118 : vector<8x1xf32>
    %120 = vector.broadcast %119 : vector<8x1xf32> to vector<8x32xf32>
    %121 = arith.mulf %116, %120 : vector<8x32xf32>
    %122 = vector.broadcast %27 : vector<1x32xf32> to vector<8x32xf32>
    %123 = arith.mulf %121, %122 : vector<8x32xf32>
    %124 = vector.broadcast %28 : vector<1x32xf32> to vector<8x32xf32>
    %125 = arith.addf %123, %124 : vector<8x32xf32>
    %c1_i32 = arith.constant 1 : i32
    %126 = arith.index_cast %c1_i32 : i32 to index
    %c0_33 = arith.constant 0 : index
    %c0_34 = arith.constant 0 : index
    %127 = vector.load %arg2[%126, %c0_33, %c0_34] : memref<2x32x96xbf16, #tpu.memory_space<vmem>>, vector<1x32x96xbf16>
    %128 = vector.shape_cast %127 : vector<1x32x96xbf16> to vector<32x96xbf16>
    %129 = arith.index_cast %c1_i32 : i32 to index
    %c0_35 = arith.constant 0 : index
    %c0_36 = arith.constant 0 : index
    %130 = vector.load %arg3[%129, %c0_35, %c0_36] : memref<2x32x32xbf16, #tpu.memory_space<vmem>>, vector<1x32x32xbf16>
    %131 = vector.shape_cast %130 : vector<1x32x32xbf16> to vector<32x32xbf16>
    %132 = arith.index_cast %c1_i32 : i32 to index
    %c0_37 = arith.constant 0 : index
    %c0_38 = arith.constant 0 : index
    %133 = vector.load %arg4[%132, %c0_37, %c0_38] : memref<2x32x64xbf16, #tpu.memory_space<vmem>>, vector<1x32x64xbf16>
    %134 = vector.shape_cast %133 : vector<1x32x64xbf16> to vector<32x64xbf16>
    %135 = arith.index_cast %c1_i32 : i32 to index
    %c0_39 = arith.constant 0 : index
    %c0_40 = arith.constant 0 : index
    %136 = vector.load %arg5[%135, %c0_39, %c0_40] : memref<2x64x32xbf16, #tpu.memory_space<vmem>>, vector<1x64x32xbf16>
    %137 = vector.shape_cast %136 : vector<1x64x32xbf16> to vector<64x32xbf16>
    %138 = arith.index_cast %c1_i32 : i32 to index
    %c0_41 = arith.constant 0 : index
    %c0_42 = arith.constant 0 : index
    %139 = vector.load %arg6[%138, %c0_41, %c0_42] : memref<2x9x32xf32, #tpu.memory_space<vmem>>, vector<1x9x32xf32>
    %140 = vector.shape_cast %139 : vector<1x9x32xf32> to vector<9x32xf32>
    %141 = arith.index_cast %c1_i32 : i32 to index
    %c0_43 = arith.constant 0 : index
    %c0_44 = arith.constant 0 : index
    %142 = vector.load %arg7[%141, %c0_43, %c0_44] : memref<2x1x64xf32, #tpu.memory_space<vmem>>, vector<1x1x64xf32>
    %143 = vector.shape_cast %142 : vector<1x1x64xf32> to vector<1x64xf32>
    %144 = vector.extract_strided_slice %140 {offsets = [0, 0], sizes = [1, 32], strides = [1, 1]} : vector<9x32xf32> to vector<1x32xf32>
    %145 = vector.extract_strided_slice %140 {offsets = [1, 0], sizes = [1, 32], strides = [1, 1]} : vector<9x32xf32> to vector<1x32xf32>
    %146 = vector.extract_strided_slice %140 {offsets = [2, 0], sizes = [1, 32], strides = [1, 1]} : vector<9x32xf32> to vector<1x32xf32>
    %147 = vector.extract_strided_slice %140 {offsets = [3, 0], sizes = [1, 32], strides = [1, 1]} : vector<9x32xf32> to vector<1x32xf32>
    %148 = vector.extract_strided_slice %140 {offsets = [4, 0], sizes = [1, 32], strides = [1, 1]} : vector<9x32xf32> to vector<1x32xf32>
    %149 = vector.extract_strided_slice %140 {offsets = [5, 0], sizes = [1, 32], strides = [1, 1]} : vector<9x32xf32> to vector<1x32xf32>
    %150 = vector.extract_strided_slice %140 {offsets = [6, 0], sizes = [1, 32], strides = [1, 1]} : vector<9x32xf32> to vector<1x32xf32>
    %151 = vector.extract_strided_slice %140 {offsets = [7, 0], sizes = [1, 32], strides = [1, 1]} : vector<9x32xf32> to vector<1x32xf32>
    %152 = vector.extract_strided_slice %140 {offsets = [8, 0], sizes = [1, 32], strides = [1, 1]} : vector<9x32xf32> to vector<1x32xf32>
    %153 = arith.truncf %125 : vector<8x32xf32> to vector<8x32xbf16>
    %cst_45 = arith.constant dense<0.000000e+00> : vector<8x96xf32>
    %154 = tpu.matmul %153, %128, %cst_45 {dimension_numbers = #tpu.dot_dimension_numbers<[1], [0], [0], [1], [0, 0, 1, 1], [], []>} : vector<8x32xbf16>, vector<32x96xbf16>, vector<8x96xf32> -> vector<8x96xf32>
    %155 = vector.extract_strided_slice %154 {offsets = [0, 0], sizes = [8, 32], strides = [1, 1]} : vector<8x96xf32> to vector<8x32xf32>
    %156 = vector.broadcast %144 : vector<1x32xf32> to vector<8x32xf32>
    %157 = arith.addf %155, %156 : vector<8x32xf32>
    %cst_46 = arith.constant 0.353553385 : f32
    %158 = vector.broadcast %cst_46 : f32 to vector<8x32xf32>
    %159 = arith.mulf %157, %158 : vector<8x32xf32>
    %160 = vector.shape_cast %159 : vector<8x32xf32> to vector<8x4x8xf32>
    %161 = tpu.transpose %160, [1, 0, 2] : vector<8x4x8xf32> -> vector<4x8x8xf32>
    %162 = arith.truncf %161 : vector<4x8x8xf32> to vector<4x8x8xbf16>
    %163 = vector.extract_strided_slice %154 {offsets = [0, 32], sizes = [8, 32], strides = [1, 1]} : vector<8x96xf32> to vector<8x32xf32>
    %164 = vector.broadcast %145 : vector<1x32xf32> to vector<8x32xf32>
    %165 = arith.addf %163, %164 : vector<8x32xf32>
    %166 = vector.shape_cast %165 : vector<8x32xf32> to vector<8x4x8xf32>
    %167 = tpu.transpose %166, [1, 0, 2] : vector<8x4x8xf32> -> vector<4x8x8xf32>
    %168 = arith.truncf %167 : vector<4x8x8xf32> to vector<4x8x8xbf16>
    %169 = vector.extract_strided_slice %154 {offsets = [0, 64], sizes = [8, 32], strides = [1, 1]} : vector<8x96xf32> to vector<8x32xf32>
    %170 = vector.broadcast %146 : vector<1x32xf32> to vector<8x32xf32>
    %171 = arith.addf %169, %170 : vector<8x32xf32>
    %172 = vector.shape_cast %171 : vector<8x32xf32> to vector<8x4x8xf32>
    %173 = tpu.transpose %172, [1, 0, 2] : vector<8x4x8xf32> -> vector<4x8x8xf32>
    %174 = arith.truncf %173 : vector<4x8x8xf32> to vector<4x8x8xbf16>
    "tpu.trace_start"() <{level = 10 : i32, message = "hqd,hkd->hqk"}> : () -> ()
    %cst_47 = arith.constant dense<0.000000e+00> : vector<4x8x8xf32>
    %175 = tpu.matmul %162, %168, %cst_47 {dimension_numbers = #tpu.dot_dimension_numbers<[2], [2], [1], [1], [0, 0, 0, 1, 1, 1], [0], [0]>} : vector<4x8x8xbf16>, vector<4x8x8xbf16>, vector<4x8x8xf32> -> vector<4x8x8xf32>
    "tpu.trace_stop"() : () -> ()
    %cst_48 = arith.constant dense<0xFF800000> : vector<4x8xf32>
    %176 = vector.multi_reduction <maximumf>, %175, %cst_48 [2] : vector<4x8x8xf32> to vector<4x8xf32>
    %177 = vector.shape_cast %176 : vector<4x8xf32> to vector<4x8x1xf32>
    %178 = vector.broadcast %177 : vector<4x8x1xf32> to vector<4x8x8xf32>
    %179 = arith.subf %175, %178 : vector<4x8x8xf32>
    %180 = math.exp %179 : vector<4x8x8xf32>
    %cst_49 = arith.constant dense<0.000000e+00> : vector<4x8xf32>
    %181 = vector.multi_reduction <add>, %180, %cst_49 [2] : vector<4x8x8xf32> to vector<4x8xf32>
    %182 = vector.shape_cast %181 : vector<4x8xf32> to vector<4x8x1xf32>
    %183 = tpu.reciprocal %182 {approx = true} : vector<4x8x1xf32> -> vector<4x8x1xf32>
    %184 = vector.broadcast %183 : vector<4x8x1xf32> to vector<4x8x8xf32>
    %185 = arith.mulf %180, %184 : vector<4x8x8xf32>
    %186 = arith.truncf %185 : vector<4x8x8xf32> to vector<4x8x8xbf16>
    "tpu.trace_start"() <{level = 10 : i32, message = "hqk,hkd->hqd"}> : () -> ()
    %cst_50 = arith.constant dense<0.000000e+00> : vector<4x8x8xf32>
    %187 = tpu.matmul %186, %174, %cst_50 {dimension_numbers = #tpu.dot_dimension_numbers<[2], [1], [1], [2], [0, 0, 0, 1, 1, 2], [0], [0]>} : vector<4x8x8xbf16>, vector<4x8x8xbf16>, vector<4x8x8xf32> -> vector<4x8x8xf32>
    "tpu.trace_stop"() : () -> ()
    %188 = tpu.transpose %187, [1, 0, 2] : vector<4x8x8xf32> -> vector<8x4x8xf32>
    %189 = vector.shape_cast %188 : vector<8x4x8xf32> to vector<8x32xf32>
    %190 = arith.truncf %189 : vector<8x32xf32> to vector<8x32xbf16>
    %cst_51 = arith.constant dense<0.000000e+00> : vector<8x32xf32>
    %191 = tpu.matmul %190, %131, %cst_51 {dimension_numbers = #tpu.dot_dimension_numbers<[1], [0], [0], [1], [0, 0, 1, 1], [], []>} : vector<8x32xbf16>, vector<32x32xbf16>, vector<8x32xf32> -> vector<8x32xf32>
    %192 = vector.broadcast %147 : vector<1x32xf32> to vector<8x32xf32>
    %193 = arith.addf %191, %192 : vector<8x32xf32>
    %194 = arith.addf %125, %193 : vector<8x32xf32>
    %cst_52 = arith.constant dense<0.000000e+00> : vector<8xf32>
    %195 = vector.multi_reduction <add>, %194, %cst_52 [1] : vector<8x32xf32> to vector<8xf32>
    %196 = vector.shape_cast %195 : vector<8xf32> to vector<8x1xf32>
    %cst_53 = arith.constant 3.200000e+01 : f32
    %197 = vector.broadcast %cst_53 : f32 to vector<8x1xf32>
    %198 = arith.divf %196, %197 : vector<8x1xf32>
    %199 = vector.broadcast %198 : vector<8x1xf32> to vector<8x32xf32>
    %200 = arith.subf %194, %199 : vector<8x32xf32>
    %201 = arith.mulf %200, %200 : vector<8x32xf32>
    %cst_54 = arith.constant dense<0.000000e+00> : vector<8xf32>
    %202 = vector.multi_reduction <add>, %201, %cst_54 [1] : vector<8x32xf32> to vector<8xf32>
    %203 = vector.shape_cast %202 : vector<8xf32> to vector<8x1xf32>
    %cst_55 = arith.constant 3.200000e+01 : f32
    %204 = vector.broadcast %cst_55 : f32 to vector<8x1xf32>
    %205 = arith.divf %203, %204 : vector<8x1xf32>
    %206 = vector.broadcast %198 : vector<8x1xf32> to vector<8x32xf32>
    %207 = arith.subf %194, %206 : vector<8x32xf32>
    %cst_56 = arith.constant 9.99999974E-6 : f32
    %208 = vector.broadcast %cst_56 : f32 to vector<8x1xf32>
    %209 = arith.addf %205, %208 : vector<8x1xf32>
    %210 = math.rsqrt %209 : vector<8x1xf32>
    %211 = vector.broadcast %210 : vector<8x1xf32> to vector<8x32xf32>
    %212 = arith.mulf %207, %211 : vector<8x32xf32>
    %213 = vector.broadcast %148 : vector<1x32xf32> to vector<8x32xf32>
    %214 = arith.mulf %212, %213 : vector<8x32xf32>
    %215 = vector.broadcast %149 : vector<1x32xf32> to vector<8x32xf32>
    %216 = arith.addf %214, %215 : vector<8x32xf32>
    %217 = arith.truncf %216 : vector<8x32xf32> to vector<8x32xbf16>
    %cst_57 = arith.constant dense<0.000000e+00> : vector<8x64xf32>
    %218 = tpu.matmul %217, %134, %cst_57 {dimension_numbers = #tpu.dot_dimension_numbers<[1], [0], [0], [1], [0, 0, 1, 1], [], []>} : vector<8x32xbf16>, vector<32x64xbf16>, vector<8x64xf32> -> vector<8x64xf32>
    %219 = vector.broadcast %143 : vector<1x64xf32> to vector<8x64xf32>
    %220 = arith.addf %218, %219 : vector<8x64xf32>
    %cst_58 = arith.constant 0.000000e+00 : f32
    %221 = vector.broadcast %cst_58 : f32 to vector<8x64xf32>
    %222 = arith.maximumf %220, %221 : vector<8x64xf32>
    %223 = arith.truncf %222 : vector<8x64xf32> to vector<8x64xbf16>
    %cst_59 = arith.constant dense<0.000000e+00> : vector<8x32xf32>
    %224 = tpu.matmul %223, %137, %cst_59 {dimension_numbers = #tpu.dot_dimension_numbers<[1], [0], [0], [1], [0, 0, 1, 1], [], []>} : vector<8x64xbf16>, vector<64x32xbf16>, vector<8x32xf32> -> vector<8x32xf32>
    %225 = vector.broadcast %150 : vector<1x32xf32> to vector<8x32xf32>
    %226 = arith.addf %224, %225 : vector<8x32xf32>
    %227 = arith.addf %216, %226 : vector<8x32xf32>
    %cst_60 = arith.constant dense<0.000000e+00> : vector<8xf32>
    %228 = vector.multi_reduction <add>, %227, %cst_60 [1] : vector<8x32xf32> to vector<8xf32>
    %229 = vector.shape_cast %228 : vector<8xf32> to vector<8x1xf32>
    %cst_61 = arith.constant 3.200000e+01 : f32
    %230 = vector.broadcast %cst_61 : f32 to vector<8x1xf32>
    %231 = arith.divf %229, %230 : vector<8x1xf32>
    %232 = vector.broadcast %231 : vector<8x1xf32> to vector<8x32xf32>
    %233 = arith.subf %227, %232 : vector<8x32xf32>
    %234 = arith.mulf %233, %233 : vector<8x32xf32>
    %cst_62 = arith.constant dense<0.000000e+00> : vector<8xf32>
    %235 = vector.multi_reduction <add>, %234, %cst_62 [1] : vector<8x32xf32> to vector<8xf32>
    %236 = vector.shape_cast %235 : vector<8xf32> to vector<8x1xf32>
    %cst_63 = arith.constant 3.200000e+01 : f32
    %237 = vector.broadcast %cst_63 : f32 to vector<8x1xf32>
    %238 = arith.divf %236, %237 : vector<8x1xf32>
    %239 = vector.broadcast %231 : vector<8x1xf32> to vector<8x32xf32>
    %240 = arith.subf %227, %239 : vector<8x32xf32>
    %cst_64 = arith.constant 9.99999974E-6 : f32
    %241 = vector.broadcast %cst_64 : f32 to vector<8x1xf32>
    %242 = arith.addf %238, %241 : vector<8x1xf32>
    %243 = math.rsqrt %242 : vector<8x1xf32>
    %244 = vector.broadcast %243 : vector<8x1xf32> to vector<8x32xf32>
    %245 = arith.mulf %240, %244 : vector<8x32xf32>
    %246 = vector.broadcast %151 : vector<1x32xf32> to vector<8x32xf32>
    %247 = arith.mulf %245, %246 : vector<8x32xf32>
    %248 = vector.broadcast %152 : vector<1x32xf32> to vector<8x32xf32>
    %249 = arith.addf %247, %248 : vector<8x32xf32>
    %c2_i32 = arith.constant 2 : i32
    %c0_65 = arith.constant 0 : index
    %c0_66 = arith.constant 0 : index
    %250 = vector.load %arg8[%c0_65, %c0_66] : memref<2x32xf32, #tpu.memory_space<vmem>>, vector<2x32xf32>
    %251 = vector.extract_strided_slice %250 {offsets = [0, 0], sizes = [1, 32], strides = [1, 1]} : vector<2x32xf32> to vector<1x32xf32>
    %252 = vector.extract_strided_slice %250 {offsets = [1, 0], sizes = [1, 32], strides = [1, 1]} : vector<2x32xf32> to vector<1x32xf32>
    %cst_67 = arith.constant dense<0.000000e+00> : vector<8xf32>
    %253 = vector.multi_reduction <add>, %249, %cst_67 [1] : vector<8x32xf32> to vector<8xf32>
    %254 = vector.shape_cast %253 : vector<8xf32> to vector<8x1xf32>
    %cst_68 = arith.constant 3.200000e+01 : f32
    %255 = vector.broadcast %cst_68 : f32 to vector<8x1xf32>
    %256 = arith.divf %254, %255 : vector<8x1xf32>
    %257 = vector.broadcast %256 : vector<8x1xf32> to vector<8x32xf32>
    %258 = arith.subf %249, %257 : vector<8x32xf32>
    %259 = arith.mulf %258, %258 : vector<8x32xf32>
    %cst_69 = arith.constant dense<0.000000e+00> : vector<8xf32>
    %260 = vector.multi_reduction <add>, %259, %cst_69 [1] : vector<8x32xf32> to vector<8xf32>
    %261 = vector.shape_cast %260 : vector<8xf32> to vector<8x1xf32>
    %cst_70 = arith.constant 3.200000e+01 : f32
    %262 = vector.broadcast %cst_70 : f32 to vector<8x1xf32>
    %263 = arith.divf %261, %262 : vector<8x1xf32>
    %264 = vector.broadcast %256 : vector<8x1xf32> to vector<8x32xf32>
    %265 = arith.subf %249, %264 : vector<8x32xf32>
    %cst_71 = arith.constant 9.99999974E-6 : f32
    %266 = vector.broadcast %cst_71 : f32 to vector<8x1xf32>
    %267 = arith.addf %263, %266 : vector<8x1xf32>
    %268 = math.rsqrt %267 : vector<8x1xf32>
    %269 = vector.broadcast %268 : vector<8x1xf32> to vector<8x32xf32>
    %270 = arith.mulf %265, %269 : vector<8x32xf32>
    %271 = vector.broadcast %251 : vector<1x32xf32> to vector<8x32xf32>
    %272 = arith.mulf %270, %271 : vector<8x32xf32>
    %273 = vector.broadcast %252 : vector<1x32xf32> to vector<8x32xf32>
    %274 = arith.addf %272, %273 : vector<8x32xf32>
    %275 = vector.shape_cast %274 : vector<8x32xf32> to vector<1x8x32xf32>
    %c0_72 = arith.constant 0 : index
    %c0_73 = arith.constant 0 : index
    %c0_74 = arith.constant 0 : index
    %276 = vector.load %arg9[%c0_72, %c0_73, %c0_74] : memref<1x8x32xf32, #tpu.memory_space<vmem>>, vector<1x8x32xf32>
    tpu.vector_store %arg9[%c0_72, %c0_73, %c0_74], %275 {strides = array<i32>} : memref<1x8x32xf32, #tpu.memory_space<vmem>>, vector<1x8x32xf32>,
    return
  }
  func.func @transform_0(%arg0: i32) -> (i32, i32, i32) {
    %c0_i32 = arith.constant 0 : i32
    %c0_i32_0 = arith.constant 0 : i32
    %c0_i32_1 = arith.constant 0 : i32
    return %arg0, %c0_i32, %c0_i32_0 : i32, i32, i32
  }
  func.func @transform_1(%arg0: i32) -> (i32, i32, i32) {
    %c0_i32 = arith.constant 0 : i32
    %c0_i32_0 = arith.constant 0 : i32
    %c0_i32_1 = arith.constant 0 : i32
    %c0_i32_2 = arith.constant 0 : i32
    return %c0_i32, %c0_i32_0, %c0_i32_1 : i32, i32, i32
  }
  func.func @transform_2(%arg0: i32) -> (i32, i32, i32) {
    %c0_i32 = arith.constant 0 : i32
    %c0_i32_0 = arith.constant 0 : i32
    %c0_i32_1 = arith.constant 0 : i32
    %c0_i32_2 = arith.constant 0 : i32
    return %c0_i32, %c0_i32_0, %c0_i32_1 : i32, i32, i32
  }
  func.func @transform_3(%arg0: i32) -> (i32, i32, i32) {
    %c0_i32 = arith.constant 0 : i32
    %c0_i32_0 = arith.constant 0 : i32
    %c0_i32_1 = arith.constant 0 : i32
    %c0_i32_2 = arith.constant 0 : i32
    return %c0_i32, %c0_i32_0, %c0_i32_1 : i32, i32, i32
  }
  func.func @transform_4(%arg0: i32) -> (i32, i32, i32) {
    %c0_i32 = arith.constant 0 : i32
    %c0_i32_0 = arith.constant 0 : i32
    %c0_i32_1 = arith.constant 0 : i32
    %c0_i32_2 = arith.constant 0 : i32
    return %c0_i32, %c0_i32_0, %c0_i32_1 : i32, i32, i32
  }
  func.func @transform_5(%arg0: i32) -> (i32, i32, i32) {
    %c0_i32 = arith.constant 0 : i32
    %c0_i32_0 = arith.constant 0 : i32
    %c0_i32_1 = arith.constant 0 : i32
    %c0_i32_2 = arith.constant 0 : i32
    return %c0_i32, %c0_i32_0, %c0_i32_1 : i32, i32, i32
  }
  func.func @transform_6(%arg0: i32) -> (i32, i32, i32) {
    %c0_i32 = arith.constant 0 : i32
    %c0_i32_0 = arith.constant 0 : i32
    %c0_i32_1 = arith.constant 0 : i32
    %c0_i32_2 = arith.constant 0 : i32
    return %c0_i32, %c0_i32_0, %c0_i32_1 : i32, i32, i32
  }
  func.func @transform_7(%arg0: i32) -> (i32, i32) {
    %c0_i32 = arith.constant 0 : i32
    %c0_i32_0 = arith.constant 0 : i32
    %c0_i32_1 = arith.constant 0 : i32
    return %c0_i32, %c0_i32_0 : i32, i32
  }
  func.func @transform_8(%arg0: i32) -> (i32, i32, i32) {
    %c0_i32 = arith.constant 0 : i32
    %c0_i32_0 = arith.constant 0 : i32
    %c0_i32_1 = arith.constant 0 : i32
    return %arg0, %c0_i32, %c0_i32_0 : i32, i32, i32
  }
}

</mosaic_0001>

<bundles_post_ra>
// kernel: tpu_custom_call.1
= control target key start
LH: loop header
LB: loop body
LE: loop exit
PB: predicated region body
PF: predicated region fallthrough
CT: control target
= control target key end

     0   :  { %13 = vsyncpa [#allocation3], 0  ;;  %s4385_s0 = inlined_call_operand.vmem [shape: f32[2,8,32], index: 0, kind: input, shape index: {}]   ;;  %s4386_s1 = inlined_call_operand.vmem [shape: bf16[2,32,96], index: 1, kind: input, shape index: {}]   ;;  %s4387_s2 = inlined_call_operand.vmem [shape: bf16[2,32,32], index: 2, kind: input, shape index: {}]   ;;  %s4388_s3 = inlined_call_operand.vmem [shape: bf16[2,32,64], index: 3, kind: input, shape index: {}]   ;;  %s4389_s4 = inlined_call_operand.vmem [shape: bf16[2,64,32], index: 4, kind: input, shape index: {}]   ;;  %s4390_s5 = inlined_call_operand.vmem [shape: f32[2,9,32], index: 5, kind: input, shape index: {}]   ;;  %s4391_s6 = inlined_call_operand.vmem [shape: f32[2,1,64], index: 6, kind: input, shape index: {}]   ;;  %s4392_s7 = inlined_call_operand.vmem [shape: f32[2,32], index: 7, kind: input, shape index: {}]   ;;  %s4393_s8 = inlined_call_operand.hbm [shape: f32[2,8,32], index: 8, kind: output, shape index: {}]  }
   0x1   :  { %15 = vsyncpa [#allocation3 + $0x1], 0  ;;  %s3739_s27 = smov 0   ;;  %s3741_s28 = smov 0  }
   0x2   :  { %s3743_s29 = smov 0   ;;  %s3745_s30 = smov 0  }
   0x3 LB: > { %s3760_s9 = sadd.s32 4294967295, %s3678_s30   ;;  %s3176_s10 = sadd.s32 4294967294, %s3678_s30   ;;  %s3678_s30 = sphi %s3745_s30, %s4408_s30   ;;  %s3674_s29 = sphi %s3743_s29, %s4407_s29   ;;  %s3670_s28 = sphi %s3741_s28, %s4406_s28   ;;  %s3666_s27 = sphi %s3739_s27, %s4405_s27  }
   0x4   : > { %s3764_s11 = sadd.s32 1, %s3678_s30   ;;  %s201_s12 = sadd.s32 1, %s3674_s29 }
   0x5   : > { %s198_s13 = ssub.s32 %s3678_s30, %s3764_s11  ;;  %p211_p0 = scmp.ne.s32.totalorder %s3674_s29, %s3670_s28 }
   0x6   : > { %p199_p1 = scmp.eq.s32.totalorder %s198_s13, 0  ;;  %p212_p2 = scmp.eq.s32.totalorder %s3760_s9, 1 }
   0x7   : > { %p217_p3 = scmp.ne.s32.totalorder %s3670_s28, %s3666_s27  ;;  %p218_p4 = scmp.eq.s32.totalorder %s3176_s10, 1 }
   0x8   : > { %s3775_s14 = scalar_select %p199_p1, %s3674_s29, %s201_s12  }
   0x9   : > { %p3777_p5 = por %p212_p2, %p211_p0  ;;  %p3781_p6 = por %p218_p4, %p217_p3 }
   0xa   : > { %p3179_p7 = scmp.ge.s32.totalorder %s3678_s30, 1  ;;  %p264_p8 = scmp.lt.s32.totalorder %s3678_s30, 3 }
   0xc   : > { %p265_p9 = pnand %p3179_p7, %p264_p8 }
   0xd   : > { %v3553_v0 = vld [vmem:[%s4386_s1] sm:$0xff] (!%p265_p9)   ;;  %v383_v1 = vlaneseq (!%p265_p9)  ;;  %v3680_v2 = vmov (!%p265_p9), 0.0   ;;  %v3554_v3 = vld [vmem:[%s4386_s1 + $0x8] sm:$0xff] (!%p265_p9)   ;;  %vm3681_vm0 = vmmov (!%p265_p9), 0   ;;  %p297_p10 = scmp.lt.s32.totalorder (!%p265_p9), %s3760_s9, 1  ;;  %vm339_vm1 = vcmask (!%p265_p9), 261120  }
   0xe   : > { %268 = sbr.rel (%p265_p9) target bundleno = 5733 (0x1665), region = 52  ;;  %3333 = vmatprep.subr.bf16.mxu1 (!%p265_p9), %v3680_v2  ;;  %3347 = vmatprep.subr.bf16.mxu0 (!%p265_p9), %v3680_v2  ;;  %v3804_v5 = vld [vmem:[%s4390_s5] sm:$0xff] (!%p265_p9)  ;;  %s3682_s12 = smov (!%p265_p9), 32   ;;  %v3688_v25 = vmov (!%p265_p9), 1983009808   ;;  %vm875_vm2 = vcmask (!%p265_p9), 64512  }
   0xf   : > { %3334 = vmatpush3.bf16.msra.mxu1 (!%p265_p9), %v3553_v0  ;;  %3337 = vmatprep.mubr.msk.bf16.mxu1 (!%p265_p9), %vm3681_vm0, %v3680_v2  ;;  %v3798_v4 = vshrl.u32 (!%p265_p9), %v383_v1, 7  ;;  %s3683_s13 = smov (!%p265_p9), 112   ;;  %s3684_s17 = smov (!%p265_p9), 120   ;;  %v402_v26 = vunpack.c.l.s4 (!%p265_p9), %v3688_v25  ;;  %v3689_v28 = vmov (!%p265_p9), 1934713408   ;;  %vm1111_vm3 = vcmask (!%p265_p9), 1043456  }
  0x10   : > { %3335 = vmatprep.subr.bf16.mxu1 (!%p265_p9), %v3680_v2  ;;  %3349 = vmatprep.mubr.msk.bf16.mxu0 (!%p265_p9), %vm3681_vm0, %v3680_v2  ;;  %s3685_s18 = smov (!%p265_p9), 104   ;;  %s3686_s19 = smov (!%p265_p9), 96   ;;  %v434_v29 = vunpack.c.l.s4 (!%p265_p9), %v3689_v28  ;;  %vm1442_vm4 = vcmask (!%p265_p9), 130048   ;;  %vm1444_vm5 = vcmask (!%p265_p9), 195584   ;;  %vm1623_vm6 = vcmask (!%p265_p9), 523264  }
  0x11   : > { %v3810_v6 = vsub.s32 (!%p265_p9), 1, %v3798_v4  ;;  %v3834_v16 = vsub.s32 (!%p265_p9), 0, %v3798_v4  ;;  %v709_v23 = vsub.s32 (!%p265_p9), 2, %v3798_v4  ;;  %s4397_s20 = smov (!%p265_p9), 64   ;;  %v403_v30 = vunpack.c.0.s8 (!%p265_p9), %v402_v26  ;;  %s4396_s25 = smov (!%p265_p9), 16  }
  0x12   : > { %v435_v33 = vunpack.c.0.s8 (!%p265_p9), %v434_v29  ;;  %s4395_s26 = smov (!%p265_p9), 8  }
  0x13   : > { %3336 = vmatpush3.bf16.msra.mxu1 (!%p265_p9), %v3554_v3  ;;  %v542_v7 = vrot.slane (!%p265_p9), %v3804_v5, %v3810_v6  ;;  %v386_v17 = vrot.slane (!%p265_p9), %v3804_v5, %v3834_v16  ;;  %v710_v24 = vrot.slane (!%p265_p9), %v3804_v5, %v709_v23  ;;  %v3851_v34 = vsub.s32 (!%p265_p9), %v403_v30, %v3798_v4 }
  0x14   : > { %3341 = vmatprep.subr.bf16.mxu1 (!%p265_p9), %v3680_v2  ;;  %v3854_v41 = vsub.s32 (!%p265_p9), %v435_v33, %v3798_v4 }
  0x15   : > { %s298_s23 = scalar_select %p297_p10, %s3760_s9, 1  ;;  %544 = vrot.lane.b32.xlu0 %v542_v7, %s3682_s12 }
  0x17   : > { %s3181_s24 = sshll.u32 %s298_s23, 3  ;;  %s294_s23 = sand.u32 1, %s3670_s28  }
  0x18   : > { %s300_s10 = scalar_lea.vmem %s4385_s0, %s3181_s24  ;;  %s3180_s24 = sshll.u32 %s294_s23, 3 }
  0x19   : > { %v3818_v8 = vld [vmem:[%s300_s10] sm:$0xff]  ;;  %s4394_s10 = smov 24  }
  0x1a   : > { %v326_v9 = vpack.c.bf16 %v3818_v8, %v3818_v8 }
  0x1c   : > { %3338 = vmatmul.mubr.msk.bf16.vlgmr.msra.gmra.mrb[0].mxu1 %vm339_vm1, %v326_v9 }
  0x1d   : > { %3343 = vmatprep.mubr.msk.bf16.mxu1 %vm3681_vm0, %v3680_v2 }
  0x87   : > { %v545_v10 = vpop.permute.xlu0 %544 }
  0xef   : > { %v3826_v11 = vpop.f32.mrb[0].mxu1 }
  0xf0   : > { %v547_v12 = vadd.f32 %v545_v10, %v3826_v11  ;;  %v3339_v13 = vpop.f32.mrb[1].mxu1  ;;  %v387_v18 = vadd.f32 %v386_v17, %v3826_v11 }
  0xf1   : > { %v380_v14 = vpop.f32.mrb[2].mxu1 }
  0xf2   : > { %551 = vrot.lane.b32.xlu1 %v547_v12, %s3683_s13  ;;  %549 = vrot.lane.b32.xlu0 %v547_v12, %s3684_s17  ;;  %v3340_v15 = vpop.f32.mrb[3].mxu1  ;;  %v388_v21 = vmul.f32 0.35355338, %v387_v18 }
  0xf6   : > { %553 = vrot.lane.b32.xlu1 %v547_v12, %s3685_s18  ;;  %555 = vrot.lane.b32.xlu0 %v547_v12, %s3686_s19 }
 0x164   : > { %v552_v19 = vpop.permute.xlu1 %551  ;;  %v550_v20 = vpop.permute.xlu0 %549 }
 0x165   : > { %559 = vrot.lane.b32.xlu0 %v552_v19, %s3686_s19  ;;  %557 = vrot.lane.b32.xlu1 %v550_v20, %s3686_s19 }
 0x168   : > { %v554_v22 = vpop.permute.xlu1 %553  ;;  %v556_v27 = vpop.permute.xlu0 %555 }
 0x169   : > { %561 = vrot.lane.b32.xlu1 %v554_v22, %s3686_s19  ;;  %390 = vrot.lane.b32.xlu0 %v388_v21, %s3684_s17 }
 0x16d   : > { %393 = vrot.lane.b32.xlu1 %v388_v21, %s3683_s13  ;;  %396 = vrot.lane.b32.xlu0 %v388_v21, %s3685_s18 }
 0x171   : > { %712 = vrot.lane.b32.xlu1 %v710_v24, %s4397_s20 }
 0x1d7   : > { %v558_v31 = vpop.permute.xlu1 %557  ;;  %v560_v32 = vpop.permute.xlu0 %559 }
 0x1d8   : > { %v567_v35 = vcombine.low %v556_v27, %v560_v32  ;;  %v568_v36 = vcombine.high %v556_v27, %v560_v32 }
 0x1da   : > { %v575_v42 = vrot.slane %v567_v35, %v3851_v34  ;;  %v582_v43 = vrot.slane %v568_v36, %v3851_v34 }
 0x1db   : > { %v562_v37 = vpop.permute.xlu1 %561  ;;  %v391_v38 = vpop.permute.xlu0 %390 }
 0x1dc   : > { %v583_v39 = vcombine.low %v558_v31, %v562_v37  ;;  %v584_v40 = vcombine.high %v558_v31, %v562_v37 }
 0x1de   : > { %v591_v44 = vrot.slane %v583_v39, %v3851_v34  ;;  %v598_v45 = vrot.slane %v584_v40, %v3851_v34 }
 0x1df   : > { %v394_v46 = vpop.permute.xlu1 %393  ;;  %v397_v47 = vpop.permute.xlu0 %396 }
 0x1e0   : > { %v599_v48 = vcombine.low %v575_v42, %v591_v44  ;;  %v600_v49 = vcombine.high %v575_v42, %v591_v44  ;;  %v615_v50 = vcombine.low %v582_v43, %v598_v45  ;;  %v616_v51 = vcombine.high %v582_v43, %v598_v45 }
 0x1e1   : > { %v399_v52 = vcombine.low %v388_v21, %v394_v46  ;;  %v400_v53 = vcombine.high %v388_v21, %v394_v46  ;;  %v415_v54 = vcombine.low %v391_v38, %v397_v47  ;;  %v416_v55 = vcombine.high %v391_v38, %v397_v47 }
 0x1e2   : > { %v607_v56 = vrot.slane %v599_v48, %v3854_v41  ;;  %v614_v57 = vrot.slane %v600_v49, %v3854_v41  ;;  %v623_v58 = vrot.slane %v615_v50, %v3854_v41  ;;  %v630_v59 = vrot.slane %v616_v51, %v3854_v41 }
 0x1e3   : > { %v407_v60 = vrot.slane %v399_v52, %v3851_v34  ;;  %v414_v61 = vrot.slane %v400_v53, %v3851_v34  ;;  %v423_v62 = vrot.slane %v415_v54, %v3851_v34  ;;  %v430_v63 = vrot.slane %v416_v55, %v3851_v34  ;;  %v713_v14 = vpop.permute.xlu1 %712 }
 0x1e4   : > { %v635_v0 = vcombine.low %v607_v56, %v614_v57  ;;  %v3187_v1 = vcombine.high %v607_v56, %v614_v57  ;;  %v651_v3 = vcombine.low %v623_v58, %v630_v59  ;;  %v3188_v7 = vcombine.high %v623_v58, %v630_v59 }
 0x1e5   : > { %v431_v9 = vcombine.low %v407_v60, %v423_v62  ;;  %v432_v10 = vcombine.high %v407_v60, %v423_v62  ;;  %v447_v12 = vcombine.low %v414_v61, %v430_v63  ;;  %v448_v13 = vcombine.high %v414_v61, %v430_v63 }
 0x1e6   : > { %v642_v15 = vrot.slane %v635_v0, %v3851_v34  ;;  %v650_v17 = vrot.slane %v3187_v1, %v3851_v34  ;;  %v658_v18 = vrot.slane %v651_v3, %v3851_v34  ;;  %v666_v19 = vrot.slane %v3188_v7, %v3851_v34 }
 0x1e7   : > { %v439_v20 = vrot.slane %v431_v9, %v3854_v41  ;;  %v446_v21 = vrot.slane %v432_v10, %v3854_v41  ;;  %v455_v22 = vrot.slane %v447_v12, %v3854_v41  ;;  %v462_v24 = vrot.slane %v448_v13, %v3854_v41 }
 0x1e8   : > { %v3877_v25 = vadd.f32 %v713_v14, %v3826_v11  ;;  %v667_v26 = vcombine.low %v642_v15, %v650_v17  ;;  %v683_v27 = vcombine.low %v658_v18, %v666_v19  ;;  %v668_v28 = vcombine.high %v642_v15, %v650_v17 }
 0x1e9   : > { %v467_v29 = vcombine.low %v439_v20, %v446_v21  ;;  %v3185_v30 = vcombine.high %v439_v20, %v446_v21  ;;  %v483_v31 = vcombine.low %v455_v22, %v462_v24  ;;  %v3186_v32 = vcombine.high %v455_v22, %v462_v24 }
 0x1ea   : > { %717 = vrot.lane.b32.xlu1 %v3877_v25, %s3684_s17  ;;  %719 = vrot.lane.b32.xlu0 %v3877_v25, %s3683_s13  ;;  %v675_v33 = vrot.slane %v667_v26, %v3854_v41  ;;  %v691_v35 = vrot.slane %v683_v27, %v3854_v41  ;;  %v682_v42 = vrot.slane %v668_v28, %v3854_v41 }
 0x1eb   : > { %v474_v11 = vrot.slane %v467_v29, %v3851_v34  ;;  %v482_v36 = vrot.slane %v3185_v30, %v3851_v34  ;;  %v490_v37 = vrot.slane %v483_v31, %v3851_v34  ;;  %v498_v38 = vrot.slane %v3186_v32, %v3851_v34 }
 0x1ec   : > { %v699_v39 = vcombine.low %v675_v33, %v691_v35  ;;  %v700_v40 = vcombine.high %v675_v33, %v691_v35  ;;  %v684_v43 = vcombine.high %v658_v18, %v666_v19 }
 0x1ed   : > { %v499_v44 = vcombine.low %v474_v11, %v482_v36  ;;  %v515_v45 = vcombine.low %v490_v37, %v498_v38  ;;  %v500_v55 = vcombine.high %v474_v11, %v482_v36  ;;  %v516_v56 = vcombine.high %v490_v37, %v498_v38 }
 0x1ee   : > { %721 = vrot.lane.b32.xlu1 %v3877_v25, %s3685_s18  ;;  %v703_v46 = vpack.c.bf16 %v699_v39, %v699_v39  ;;  %v704_v47 = vpack.c.bf16 %v700_v40, %v700_v40  ;;  %v698_v48 = vrot.slane %v684_v43, %v3854_v41 }
 0x1ef   : > { %v507_v49 = vrot.slane %v499_v44, %v3854_v41  ;;  %v523_v50 = vrot.slane %v515_v45, %v3854_v41  ;;  %v514_v63 = vrot.slane %v500_v55, %v3854_v41  ;;  %v530_v0 = vrot.slane %v516_v56, %v3854_v41 }
 0x1f0   : > { %v880_v51 = vsel %vm875_vm2, %v703_v46, 0  ;;  %v926_v52 = vsel %vm875_vm2, %v704_v47, 0  ;;  %v701_v53 = vcombine.low %v682_v42, %v698_v48  ;;  %v702_v54 = vcombine.high %v682_v42, %v698_v48 }
 0x1f1   : > { %3342 = vmatpush3.bf16.xpose.msra.mxu1 %v880_v51  ;;  %3348 = vmatpush3.bf16.xpose.msra.mxu0 %v926_v52  ;;  %v531_v57 = vcombine.low %v507_v49, %v523_v50  ;;  %v532_v58 = vcombine.high %v507_v49, %v523_v50  ;;  %v533_v7 = vcombine.low %v514_v63, %v530_v0 }
 0x1f2   : > { %3353 = vmatprep.subr.bf16.mxu1 %v3680_v2  ;;  %3359 = vmatprep.subr.bf16.mxu0 %v3680_v2  ;;  %v705_v59 = vpack.c.bf16 %v701_v53, %v701_v53  ;;  %v706_v60 = vpack.c.bf16 %v702_v54, %v702_v54  ;;  %v534_v9 = vcombine.high %v514_v63, %v530_v0 }
 0x1f3   : > { %v535_v61 = vpack.c.bf16 %v531_v57, %v531_v57  ;;  %v536_v62 = vpack.c.bf16 %v532_v58, %v532_v58  ;;  %v537_v10 = vpack.c.bf16 %v533_v7, %v533_v7 }
 0x1f4   : > { %v972_v1 = vsel %vm875_vm2, %v705_v59, 0  ;;  %v1018_v3 = vsel %vm875_vm2, %v706_v60, 0  ;;  %v538_v12 = vpack.c.bf16 %v534_v9, %v534_v9 }
 0x1f8   : > { %3344 = vmatmul.mubr.msk.bf16.vlgmr.msra.gmra.mrb[4].mxu1 %vm875_vm2, %v535_v61  ;;  %3350 = vmatmul.mubr.msk.bf16.vlgmr.msra.gmra.mrb[0].mxu0 %vm875_vm2, %v536_v62 }
 0x1f9   : > { %3354 = vmatpush3.bf16.xpose.msra.mxu1 %v972_v1  ;;  %3360 = vmatpush3.bf16.xpose.msra.mxu0 %v1018_v3 }
 0x1fa   : > { %3355 = vmatprep.mubr.msk.bf16.mxu1 %vm3681_vm0, %v3680_v2  ;;  %3361 = vmatprep.mubr.msk.bf16.mxu0 %vm3681_vm0, %v3680_v2 }
 0x1fb   : > { %3365 = vmatprep.subr.bf16.mxu1 %v3680_v2  ;;  %3371 = vmatprep.subr.bf16.mxu0 %v3680_v2 }
 0x200   : > { %3356 = vmatmul.mubr.msk.bf16.vlgmr.msra.gmra.mrb[8].mxu1 %vm875_vm2, %v537_v10  ;;  %3362 = vmatmul.mubr.msk.bf16.vlgmr.msra.gmra.mrb[4].mxu0 %vm875_vm2, %v538_v12 }
 0x201   : > { %3367 = vmatprep.mubr.msk.bf16.mxu1 %vm3681_vm0, %v3680_v2  ;;  %3373 = vmatprep.mubr.msk.bf16.mxu0 %vm3681_vm0, %v3680_v2 }
 0x25c   : > { %v718_v36 = vpop.permute.xlu1 %717  ;;  %v720_v37 = vpop.permute.xlu0 %719 }
 0x260   : > { %v722_v38 = vpop.permute.xlu1 %721 }
 0x2cb   : > { %v916_v13 = vpop.f32.mrb[4].mxu1  ;;  %v962_v14 = vpop.f32.mrb[0].mxu0 }
 0x2cc   : > { %v3345_v15 = vpop.f32.mrb[5].mxu1  ;;  %v3351_v17 = vpop.f32.mrb[1].mxu0  ;;  %v1063_v18 = vsel %vm875_vm2, %v962_v14, -inf  ;;  %v1060_v19 = vsel %vm875_vm2, %v916_v13, -inf }
 0x2cd   : > { %1064 = vmax.xlane.f32.xlu1 %v1063_v18  ;;  %v965_v20 = vpop.f32.mrb[2].mxu0  ;;  %1061 = vmax.xlane.f32.xlu0 %v1060_v19  ;;  %v919_v21 = vpop.f32.mrb[6].mxu1 }
 0x2ce   : > { %v3346_v22 = vpop.f32.mrb[7].mxu1  ;;  %v3352_v24 = vpop.f32.mrb[3].mxu0 }
 0x2d3   : > { %v1008_v26 = vpop.f32.mrb[8].mxu1  ;;  %v1054_v27 = vpop.f32.mrb[4].mxu0 }
 0x2d4   : > { %v3357_v28 = vpop.f32.mrb[9].mxu1  ;;  %v3363_v29 = vpop.f32.mrb[5].mxu0  ;;  %v1066_v30 = vsel %vm875_vm2, %v1008_v26, -inf  ;;  %v1069_v11 = vsel %vm875_vm2, %v1054_v27, -inf }
 0x2d5   : > { %v1057_v31 = vpop.f32.mrb[6].mxu0  ;;  %1067 = vmax.xlane.f32.xlu0 %v1066_v30  ;;  %v1011_v32 = vpop.f32.mrb[10].mxu1 }
 0x2d6   : > { %v3358_v33 = vpop.f32.mrb[11].mxu1  ;;  %v3364_v35 = vpop.f32.mrb[7].mxu0 }
 0x2d9   : > { %1070 = vmax.xlane.f32.xlu0 %v1069_v11 }
 0x2de   : > { %725 = vrot.lane.b32.xlu1 %v718_v36, %s4397_s20 }
 0x2ef   : > { %723 = vrot.lane.b32.xlu0 %v3877_v25, %s4397_s20 }
 0x35a   : > { %v1065_v39 = vpop.xlane.xlu1 %1064  ;;  %v1062_v40 = vpop.xlane.xlu0 %1061 }
 0x35b   : > { %v1073_v42 = vsub.f32 %v962_v14, %v1065_v39  ;;  %v1072_v43 = vsub.f32 %v916_v13, %v1062_v40 }
 0x35d   : > { %v1078_v44 = vmul.f32 1.442695, %v1073_v42  ;;  %v1076_v45 = vmul.f32 1.442695, %v1072_v43 }
 0x35e   : > { %v726_v60 = vpop.permute.xlu1 %725 }
 0x35f   : > { %3573 = vpow2.f32 %v1078_v44 }
 0x360   : > { %3575 = vpow2.f32 %v1076_v45 }
 0x362   : > { %v1068_v49 = vpop.xlane.xlu0 %1067 }
 0x363   : > { %v1074_v52 = vsub.f32 %v1008_v26, %v1068_v49 }
 0x365   : > { %v1080_v54 = vmul.f32 1.442695, %v1074_v52 }
 0x366   : > { %v1071_v50 = vpop.xlane.xlu0 %1070 }
 0x367   : > { %v1075_v51 = vsub.f32 %v1054_v27, %v1071_v50 }
 0x369   : > { %v3924_v46 = vpop.eup %3573  ;;  %v1082_v53 = vmul.f32 1.442695, %v1075_v51 }
 0x36a   : > { %v3926_v47 = vpop.eup %3575  ;;  %v1087_v48 = vsel %vm875_vm2, %v3924_v46, 0.0  ;;  %v724_v59 = vpop.permute.xlu0 %723 }
 0x36b   : > { %v1084_v25 = vsel %vm875_vm2, %v3926_v47, 0.0  ;;  %1088 = vadd.xlane.f32.xlu0 %v1087_v48  ;;  %3577 = vpow2.f32 %v1082_v53 }
 0x36c   : > { %1085 = vadd.xlane.f32.xlu1 %v1084_v25  ;;  %3579 = vpow2.f32 %v1080_v54 }
 0x375   : > { %v3934_v55 = vpop.eup %3577 }
 0x376   : > { %v3936_v56 = vpop.eup %3579  ;;  %v1093_v57 = vsel %vm875_vm2, %v3934_v55, 0.0 }
 0x377   : > { %v1090_v58 = vsel %vm875_vm2, %v3936_v56, 0.0 }
 0x37d   : > { %727 = vrot.lane.b32.xlu1 %v720_v37, %s4397_s20 }
 0x381   : > { %729 = vrot.lane.b32.xlu0 %v722_v38, %s4397_s20  ;;  %s4402_s20 = smov 16  }
 0x3a0   : > { %1094 = vadd.xlane.f32.xlu0 %v1093_v57 }
 0x3a1   : > { %1091 = vadd.xlane.f32.xlu1 %v1090_v58 }
 0x3f8   : > { %v1089_v61 = vpop.xlane.xlu0 %1088 }
 0x3f9   : > { %v1086_v62 = vpop.xlane.xlu1 %1085  ;;  %3581 = vrcp.f32 %v1089_v61 }
 0x3fa   : > { %3583 = vrcp.f32 %v1086_v62 }
 0x3fc   : > { %v730_v63 = vpop.permute.xlu0 %729 }
 0x3fd   : > { %v728_v0 = vpop.permute.xlu1 %727  ;;  %v751_v1 = vcombine.low %v726_v60, %v730_v63  ;;  %v752_v3 = vcombine.high %v726_v60, %v730_v63 }
 0x3fe   : > { %v735_v7 = vcombine.low %v724_v59, %v728_v0  ;;  %v736_v9 = vcombine.high %v724_v59, %v728_v0 }
 0x3ff   : > { %v759_v10 = vrot.slane %v751_v1, %v3851_v34  ;;  %v766_v12 = vrot.slane %v752_v3, %v3851_v34 }
 0x400   : > { %v743_v13 = vrot.slane %v735_v7, %v3851_v34  ;;  %v750_v14 = vrot.slane %v736_v9, %v3851_v34 }
 0x402   : > { %v767_v15 = vcombine.low %v743_v13, %v759_v10  ;;  %v768_v17 = vcombine.high %v743_v13, %v759_v10  ;;  %v783_v18 = vcombine.low %v750_v14, %v766_v12  ;;  %v784_v19 = vcombine.high %v750_v14, %v766_v12 }
 0x403   : > { %v3582_v40 = vpop.eup %3581 }
 0x404   : > { %v775_v20 = vrot.slane %v767_v15, %v3854_v41  ;;  %v782_v21 = vrot.slane %v768_v17, %v3854_v41  ;;  %v791_v22 = vrot.slane %v783_v18, %v3854_v41  ;;  %v798_v24 = vrot.slane %v784_v19, %v3854_v41  ;;  %v3584_v44 = vpop.eup %3583 }
 0x405   : > { %v1100_v50 = vmul.f32 %v3584_v44, %v3926_v47  ;;  %v1101_v51 = vmul.f32 %v3582_v40, %v3924_v46 }
 0x406   : > { %v803_v26 = vcombine.low %v775_v20, %v782_v21  ;;  %v3189_v27 = vcombine.high %v775_v20, %v782_v21  ;;  %v819_v28 = vcombine.low %v791_v22, %v798_v24  ;;  %v3190_v29 = vcombine.high %v791_v22, %v798_v24 }
 0x407   : > { %v1104_v60 = vpack.c.bf16 %v1100_v50, %v1100_v50  ;;  %v1105_v61 = vpack.c.bf16 %v1101_v51, %v1101_v51 }
 0x408   : > { %v810_v30 = vrot.slane %v803_v26, %v3851_v34  ;;  %v818_v31 = vrot.slane %v3189_v27, %v3851_v34  ;;  %v826_v32 = vrot.slane %v819_v28, %v3851_v34  ;;  %v834_v33 = vrot.slane %v3190_v29, %v3851_v34 }
 0x40a   : > { %v835_v35 = vcombine.low %v810_v30, %v818_v31  ;;  %v836_v11 = vcombine.high %v810_v30, %v818_v31  ;;  %v851_v36 = vcombine.low %v826_v32, %v834_v33  ;;  %v852_v37 = vcombine.high %v826_v32, %v834_v33 }
 0x40c   : > { %v843_v38 = vrot.slane %v835_v35, %v3854_v41  ;;  %v850_v39 = vrot.slane %v836_v11, %v3854_v41  ;;  %v859_v42 = vrot.slane %v851_v36, %v3854_v41  ;;  %v866_v43 = vrot.slane %v852_v37, %v3854_v41 }
 0x40e   : > { %v867_v45 = vcombine.low %v843_v38, %v859_v42  ;;  %v868_v48 = vcombine.high %v843_v38, %v859_v42  ;;  %v869_v25 = vcombine.low %v850_v39, %v866_v43  ;;  %v870_v49 = vcombine.high %v850_v39, %v866_v43  ;;  %v3555_v42 = vld [vmem:[%s4387_s2] sm:$0xff]  }
 0x410   : > { %v871_v52 = vpack.c.bf16 %v867_v45, %v867_v45  ;;  %v872_v53 = vpack.c.bf16 %v868_v48, %v868_v48  ;;  %v873_v58 = vpack.c.bf16 %v869_v25, %v869_v25  ;;  %v874_v59 = vpack.c.bf16 %v870_v49, %v870_v49 }
 0x412   : > { %v1113_v54 = vsel %vm1111_vm3, %v871_v52, 0  ;;  %v1159_v57 = vsel %vm1111_vm3, %v872_v53, 0  ;;  %v1205_v46 = vsel %vm1111_vm3, %v873_v58, 0  ;;  %v1251_v47 = vsel %vm1111_vm3, %v874_v59, 0  ;;  %v3556_v58 = vld [vmem:[%s4387_s2 + $0x8] sm:$0xff]  }
 0x413   : > { %3366 = vmatpush3.bf16.msra.mxu1 %v1113_v54  ;;  %3372 = vmatpush3.bf16.msra.mxu0 %v1159_v57 }
 0x414   : > { %3377 = vmatprep.subr.bf16.mxu1 %v3680_v2  ;;  %3383 = vmatprep.subr.bf16.mxu0 %v3680_v2 }
 0x416   : > { %3368 = vmatmul.mubr.msk.bf16.vlgmr.msra.gmra.mrb[12].mxu1 %vm875_vm2, %v1104_v60  ;;  %3374 = vmatmul.mubr.msk.bf16.vlgmr.msra.gmra.mrb[8].mxu0 %vm875_vm2, %v1105_v61 }
 0x417   : > { %3378 = vmatpush3.bf16.msra.mxu1 %v1205_v46  ;;  %3384 = vmatpush3.bf16.msra.mxu0 %v1251_v47 }
 0x418   : > { %3379 = vmatprep.mubr.msk.bf16.mxu1 %vm3681_vm0, %v3680_v2  ;;  %3385 = vmatprep.mubr.msk.bf16.mxu0 %vm3681_vm0, %v3680_v2 }
 0x419   : > { %3389 = vmatprep.subr.bf16.mxu1 %v3680_v2  ;;  %3397 = vmatprep.subr.bf16.mxu0 %v3680_v2 }
 0x42d   : > { %v1095_v62 = vpop.xlane.xlu0 %1094 }
 0x42e   : > { %v1092_v63 = vpop.xlane.xlu1 %1091  ;;  %3585 = vrcp.f32 %v1095_v62 }
 0x42f   : > { %3587 = vrcp.f32 %v1092_v63 }
 0x438   : > { %v3586_v0 = vpop.eup %3585 }
 0x439   : > { %v3588_v1 = vpop.eup %3587  ;;  %v1103_v3 = vmul.f32 %v3586_v0, %v3934_v55 }
 0x43a   : > { %v1102_v7 = vmul.f32 %v3588_v1, %v3936_v56 }
 0x43b   : > { %v1107_v9 = vpack.c.bf16 %v1103_v3, %v1103_v3 }
 0x43c   : > { %v1106_v10 = vpack.c.bf16 %v1102_v7, %v1102_v7 }
 0x43d   : > { %3386 = vmatmul.mubr.msk.bf16.vlgmr.msra.gmra.mrb[12].mxu0 %vm875_vm2, %v1107_v9 }
 0x43e   : > { %3380 = vmatmul.mubr.msk.bf16.vlgmr.msra.gmra.mrb[16].mxu1 %vm875_vm2, %v1106_v10  ;;  %3401 = vmatprep.mubr.msk.bf16.mxu0 %vm3681_vm0, %v3680_v2 }
 0x43f   : > { %3393 = vmatprep.mubr.msk.bf16.mxu1 %vm3681_vm0, %v3680_v2  ;;  %3390 = vmatpush3.bf16.msra.mxu1 %v3555_v42 }
 0x440   : > { %3391 = vmatprep.subr.bf16.mxu1 %v3680_v2 }
 0x443   : > { %3392 = vmatpush3.bf16.msra.mxu1 %v3556_v58 }
 0x444   : > { %3405 = vmatprep.subr.bf16.mxu1 %v3680_v2 }
 0x4e9   : > { %v1149_v12 = vpop.f32.mrb[12].mxu1  ;;  %v1195_v13 = vpop.f32.mrb[8].mxu0 }
 0x4ea   : > { %v3369_v14 = vpop.f32.mrb[13].mxu1  ;;  %v3375_v15 = vpop.f32.mrb[9].mxu0 }
 0x4eb   : > { %v1152_v17 = vpop.f32.mrb[14].mxu1  ;;  %v1198_v55 = vpop.f32.mrb[10].mxu0 }
 0x4ec   : > { %v3370_v18 = vpop.f32.mrb[15].mxu1  ;;  %v3376_v56 = vpop.f32.mrb[11].mxu0 }
 0x4ed   : > { %v1449_v18 = vsub.s32 3, %v3798_v4 }
 0x4ef   : > { %v1450_v56 = vrot.slane %v3804_v5, %v1449_v18 }
 0x510   : > { %v1287_v19 = vpop.f32.mrb[12].mxu0 }
 0x511   : > { %v1241_v20 = vpop.f32.mrb[16].mxu1  ;;  %v1309_v21 = vcombine.low %v1195_v13, %v1287_v19  ;;  %v1310_v22 = vcombine.high %v1195_v13, %v1287_v19  ;;  %v3387_v24 = vpop.f32.mrb[13].mxu0 }
 0x512   : > { %v1293_v26 = vcombine.low %v1149_v12, %v1241_v20  ;;  %v1294_v27 = vcombine.high %v1149_v12, %v1241_v20  ;;  %v3381_v28 = vpop.f32.mrb[17].mxu1  ;;  %v1290_v29 = vpop.f32.mrb[14].mxu0 }
 0x513   : > { %v1317_v30 = vrot.slane %v1309_v21, %v3851_v34  ;;  %v1324_v31 = vrot.slane %v1310_v22, %v3851_v34  ;;  %v1244_v32 = vpop.f32.mrb[18].mxu1  ;;  %v3388_v33 = vpop.f32.mrb[15].mxu0 }
 0x514   : > { %v1301_v35 = vrot.slane %v1293_v26, %v3851_v34  ;;  %v1308_v11 = vrot.slane %v1294_v27, %v3851_v34  ;;  %v3382_v36 = vpop.f32.mrb[19].mxu1  ;;  %v3557_v33 = vld [vmem:[%s4388_s3] sm:$0xff]  }
 0x515   : > { %3398 = vmatpush3.bf16.msra.mxu0 %v3557_v33 }
 0x516   : > { %v1325_v37 = vcombine.low %v1301_v35, %v1317_v30  ;;  %v1326_v38 = vcombine.high %v1301_v35, %v1317_v30  ;;  %v1341_v39 = vcombine.low %v1308_v11, %v1324_v31  ;;  %v1342_v40 = vcombine.high %v1308_v11, %v1324_v31  ;;  %v3558_v35 = vld [vmem:[%s4388_s3 + $0x8] sm:$0xff]   ;;  %3399 = vmatprep.subr.bf16.mxu0 %v3680_v2 }
 0x517   : > { %v3560_v11 = vld [vmem:[%s4389_s4 + $0x8] sm:$0xff]  }
 0x518   : > { %v1333_v43 = vrot.slane %v1325_v37, %v3854_v41  ;;  %v1340_v44 = vrot.slane %v1326_v38, %v3854_v41  ;;  %v1349_v45 = vrot.slane %v1341_v39, %v3854_v41  ;;  %v1356_v48 = vrot.slane %v1342_v40, %v3854_v41 }
 0x519   : > { %3400 = vmatpush3.bf16.msra.mxu0 %v3558_v35  ;;  %v1523_v39 = vsub.s32 4, %v3798_v4  ;;  %v1528_v40 = vsub.s32 5, %v3798_v4 }
 0x51a   : > { %v1361_v25 = vcombine.low %v1333_v43, %v1340_v44  ;;  %v3199_v49 = vcombine.high %v1333_v43, %v1340_v44  ;;  %v1377_v50 = vcombine.low %v1349_v45, %v1356_v48  ;;  %v3200_v51 = vcombine.high %v1349_v45, %v1356_v48  ;;  %3417 = vmatprep.subr.bf16.mxu0 %v3680_v2 }
 0x51b   : > { %v1524_v42 = vrot.slane %v3804_v5, %v1523_v39  ;;  %v1529_v45 = vrot.slane %v3804_v5, %v1528_v40 }
 0x51c   : > { %v1368_v52 = vrot.slane %v1361_v25, %v3851_v34  ;;  %v1376_v53 = vrot.slane %v3199_v49, %v3851_v34  ;;  %v1384_v54 = vrot.slane %v1377_v50, %v3851_v34  ;;  %v1392_v57 = vrot.slane %v3200_v51, %v3851_v34  ;;  %v3561_v50 = vld [vmem:[%s4389_s4 + $0x10] sm:$0xff]   ;;  %v3562_v51 = vld [vmem:[%s4389_s4 + $0x18] sm:$0xff]  }
 0x51e   : > { %v1394_v59 = vcombine.high %v1368_v52, %v1376_v53  ;;  %v1410_v60 = vcombine.high %v1384_v54, %v1392_v57  ;;  %v1393_v61 = vcombine.low %v1368_v52, %v1376_v53  ;;  %v1409_v46 = vcombine.low %v1384_v54, %v1392_v57  ;;  %v3204_v52 = vld [vmem:[%s4391_s6] ss:$0 sm:$0xff] }
 0x520   : > { %v1408_v47 = vrot.slane %v1394_v59, %v3854_v41  ;;  %v1424_v62 = vrot.slane %v1410_v60, %v3854_v41  ;;  %v1401_v63 = vrot.slane %v1393_v61, %v3854_v41  ;;  %v1417_v0 = vrot.slane %v1409_v46, %v3854_v41 }
 0x521   : > { %v1597_v46 = vsub.s32 6, %v3798_v4 }
 0x522   : > { %v1427_v1 = vcombine.low %v1408_v47, %v1424_v62  ;;  %v1426_v3 = vcombine.high %v1401_v63, %v1417_v0  ;;  %v1428_v7 = vcombine.high %v1408_v47, %v1424_v62  ;;  %v1425_v9 = vcombine.low %v1401_v63, %v1417_v0 }
 0x523   : > { %v1598_v47 = vrot.slane %v3804_v5, %v1597_v46  ;;  %v3563_v5 = vld [vmem:[%s4386_s1 + $0x10] sm:$0xff]  }
 0x524   : > { %1434 = vrot.lane.b32.xlu1 %v1427_v1, %s4396_s25  ;;  %1430 = vrot.lane.b32.xlu0 %v1426_v3, %s4395_s26  ;;  %s4403_s25 = smov 8   ;;  %s4404_s26 = smov 24  }
 0x528   : > { %1438 = vrot.lane.b32.xlu1 %v1428_v7, %s4394_s10  ;;  %s3104_s10 = scalar_lea.sflag [#allocation3], %s294_s23 }
 0x596   : > { %v1435_v10 = vpop.permute.xlu1 %1434  ;;  %v1431_v12 = vpop.permute.xlu0 %1430 }
 0x597   : > { %v1441_v13 = vsel %vm875_vm2, %v1425_v9, %v1431_v12 }
 0x598   : > { %v1443_v15 = vsel %vm1442_vm4, %v1441_v13, %v1435_v10 }
 0x59a   : > { %v1439_v14 = vpop.permute.xlu1 %1438 }
 0x59b   : > { %v1445_v17 = vsel %vm1444_vm5, %v1443_v15, %v1439_v14 }
 0x59c   : > { %v1446_v55 = vpack.c.bf16 %v1445_v17, %v1445_v17  ;;  %v3564_v17 = vld [vmem:[%s4386_s1 + $0x18] sm:$0xff]  }
 0x59e   : > { %3394 = vmatmul.mubr.msk.bf16.vlgmr.msra.gmra.mrb[20].mxu1 %vm339_vm1, %v1446_v55  ;;  %v4079_v55 = vld [vmem:[%s4390_s5 + $0x10] sm:$0xff] }
 0x59f   : > { %3413 = vmatprep.mubr.msk.bf16.mxu1 %vm3681_vm0, %v3680_v2 }
 0x671   : > { %v1500_v19 = vpop.f32.mrb[20].mxu1 }
 0x672   : > { %v1501_v20 = vadd.f32 %v1500_v19, %v1450_v56  ;;  %v3395_v21 = vpop.f32.mrb[21].mxu1  ;;  %v1935_v56 = vrot.slane %v4079_v55, %v3810_v6 }
 0x673   : > { %v1503_v22 = vpop.f32.mrb[22].mxu1 }
 0x674   : > { %v3396_v24 = vpop.f32.mrb[23].mxu1  ;;  %v1506_v26 = vadd.f32 %v1501_v20, %v3818_v8  ;;  %v3559_v8 = vld [vmem:[%s4389_s4] sm:$0xff]   ;;  %v1683_v22 = vsub.s32 7, %v3798_v4 }
 0x675   : > { %3406 = vmatpush3.bf16.msra.mxu1 %v3559_v8  ;;  %v3615_v24 = vld [vmem:[%s4390_s5] sm:$0xff] }
 0x676   : > { %v1507_v27 = vsel %vm339_vm1, %v1506_v26, 0.0  ;;  %3407 = vmatprep.subr.bf16.mxu1 %v3680_v2 }
 0x677   : > { %1508 = vadd.xlane.f32.xlu0 %v1507_v27 }
 0x679   : > { %3408 = vmatpush3.bf16.msra.mxu1 %v3560_v11 }
 0x67a   : > { %3409 = vmatprep.subr.bf16.mxu1 %v3680_v2 }
 0x67d   : > { %3410 = vmatpush3.bf16.msra.mxu1 %v3561_v50 }
 0x67e   : > { %3411 = vmatprep.subr.bf16.mxu1 %v3680_v2 }
 0x681   : > { %3412 = vmatpush3.bf16.msra.mxu1 %v3562_v51 }
 0x682   : > { %3431 = vmatprep.subr.bf16.mxu1 %v3680_v2 }
 0x704   : > { %v1509_v28 = vpop.xlane.xlu0 %1508 }
 0x705   : > { %v1511_v29 = vmul.f32 0.03125, %v1509_v28 }
 0x707   : > { %v1512_v30 = vsub.f32 %v1506_v26, %v1511_v29  ;;  %v1684_v26 = vrot.slane %v3615_v24, %v1683_v22  ;;  %v3213_v29 = vld [vmem:[%s4390_s5 + $0x8] ss:$0 sm:$0xff] }
 0x709   : > { %v1513_v31 = vmul.f32 %v1512_v30, %v1512_v30 }
 0x70b   : > { %v1514_v32 = vsel %vm339_vm1, %v1513_v31, 0.0 }
 0x70c   : > { %1515 = vadd.xlane.f32.xlu1 %v1514_v32 }
 0x71d   : > { %1937 = vrot.lane.b32.xlu1 %v1935_v56, %s3682_s12  ;;  %s4401_s12 = smov 64  }
 0x799   : > { %v1516_v36 = vpop.xlane.xlu1 %1515 }
 0x79a   : > { %v1517_v37 = vmul.f32 0.03125, %v1516_v36 }
 0x79c   : > { %v1518_v38 = vadd.f32 1e-05, %v1517_v37 }
 0x79d   : > { %v1938_v33 = vpop.permute.xlu1 %1937 }
 0x79e   : > { %3589 = vrsqrt.f32 %v1518_v38  ;;  %v1779_v38 = vrot.slane %v4079_v55, %v3834_v16 }
 0x7a8   : > { %v3590_v43 = vpop.eup %3589 }
 0x7a9   : > { %v1520_v44 = vmul.f32 %v3590_v43, %v1512_v30 }
 0x7ab   : > { %v1525_v48 = vmul.f32 %v1524_v42, %v1520_v44 }
 0x7ad   : > { %v1530_v25 = vadd.f32 %v1529_v45, %v1525_v48 }
 0x7af   : > { %v1531_v49 = vpack.c.bf16 %v1530_v25, %v1530_v25 }
 0x7b1   : > { %3402 = vmatmul.mubr.msk.bf16.vlgmr.msra.gmra.mrb[16].mxu0 %vm339_vm1, %v1531_v49 }
 0x7b2   : > { %3421 = vmatprep.mubr.msk.bf16.mxu0 %vm3681_vm0, %v3680_v2  ;;  %3418 = vmatpush3.bf16.msra.mxu0 %v3563_v5 }
 0x7b3   : > { %3419 = vmatprep.subr.bf16.mxu0 %v3680_v2 }
 0x7b6   : > { %3420 = vmatpush3.bf16.msra.mxu0 %v3564_v17 }
 0x7b7   : > { %3425 = vmatprep.subr.bf16.mxu0 %v3680_v2 }
 0x884   : > { %v1587_v53 = vpop.f32.mrb[16].mxu0 }
 0x885   : > { %v1588_v54 = vadd.f32 %v3204_v52, %v1587_v53  ;;  %v3403_v57 = vpop.f32.mrb[17].mxu0 }
 0x886   : > { %v1590_v58 = vpop.f32.mrb[18].mxu0 }
 0x887   : > { %v1593_v59 = vmax.f32 %v1588_v54, 0.0  ;;  %v3404_v60 = vpop.f32.mrb[19].mxu0 }
 0x889   : > { %v1594_v61 = vpack.c.bf16 %v1593_v59, %v1593_v59 }
 0x88b   : > { %3414 = vmatmul.mubr.msk.bf16.vlgmr.msra.gmra.mrb[24].mxu1 %vm1623_vm6, %v1594_v61 }
 0x88c   : > { %3433 = vmatprep.mubr.msk.bf16.mxu1 %vm3681_vm0, %v3680_v2 }
 0x95e   : > { %v1661_v62 = vpop.f32.mrb[24].mxu1 }
 0x95f   : > { %v1662_v63 = vadd.f32 %v1661_v62, %v1598_v47  ;;  %v3415_v0 = vpop.f32.mrb[25].mxu1 }
 0x960   : > { %v1664_v1 = vpop.f32.mrb[26].mxu1 }
 0x961   : > { %v3416_v3 = vpop.f32.mrb[27].mxu1  ;;  %v1667_v7 = vadd.f32 %v1662_v63, %v1530_v25  ;;  %v2103_v25 = vrot.slane %v4079_v55, %v709_v23 }
 0x963   : > { %v1668_v9 = vsel %vm339_vm1, %v1667_v7, 0.0 }
 0x964   : > { %1669 = vadd.xlane.f32.xlu0 %v1668_v9 }
 0x9f1   : > { %v1670_v10 = vpop.xlane.xlu0 %1669 }
 0x9f2   : > { %v1671_v12 = vmul.f32 0.03125, %v1670_v10 }
 0x9f4   : > { %v1672_v13 = vsub.f32 %v1667_v7, %v1671_v12 }
 0x9f6   : > { %v1673_v14 = vmul.f32 %v1672_v13, %v1672_v13 }
 0x9f8   : > { %v1674_v15 = vsel %vm339_vm1, %v1673_v14, 0.0 }
 0x9f9   : > { %1675 = vadd.xlane.f32.xlu0 %v1674_v15 }
 0xa86   : > { %v1676_v19 = vpop.xlane.xlu0 %1675 }
 0xa87   : > { %v1677_v20 = vmul.f32 0.03125, %v1676_v19 }
 0xa89   : > { %v1678_v21 = vadd.f32 1e-05, %v1677_v20 }
 0xa8b   : > { %3591 = vrsqrt.f32 %v1678_v21 }
 0xa95   : > { %v3592_v27 = vpop.eup %3591 }
 0xa96   : > { %v1680_v28 = vmul.f32 %v3592_v27, %v1672_v13 }
 0xa98   : > { %v1685_v30 = vmul.f32 %v1684_v26, %v1680_v28 }
 0xa9a   : > { %v4094_v31 = vadd.f32 %v3213_v29, %v1685_v30 }
 0xa9c   : > { %v1720_v32 = vpack.c.bf16 %v4094_v31, %v4094_v31 }
 0xa9e   : > { %3422 = vmatmul.mubr.msk.bf16.vlgmr.msra.gmra.mrb[20].mxu0 %vm339_vm1, %v1720_v32 }
 0xa9f   : > { %3427 = vmatprep.mubr.msk.bf16.mxu0 %vm3681_vm0, %v3680_v2 }
 0xb71   : > { %v4101_v35 = vpop.f32.mrb[20].mxu0 }
 0xb72   : > { %v1940_v8 = vadd.f32 %v1938_v33, %v4101_v35  ;;  %v3423_v11 = vpop.f32.mrb[21].mxu0  ;;  %v1780_v42 = vadd.f32 %v1779_v38, %v4101_v35 }
 0xb73   : > { %v1773_v36 = vpop.f32.mrb[22].mxu0 }
 0xb74   : > { %1944 = vrot.lane.b32.xlu1 %v1940_v8, %s3683_s13  ;;  %1942 = vrot.lane.b32.xlu0 %v1940_v8, %s3684_s17  ;;  %v3424_v37 = vpop.f32.mrb[23].mxu0  ;;  %v1781_v45 = vmul.f32 0.35355338, %v1780_v42 }
 0xb78   : > { %1946 = vrot.lane.b32.xlu1 %v1940_v8, %s3685_s18  ;;  %1948 = vrot.lane.b32.xlu0 %v1940_v8, %s3686_s19 }
 0xbe6   : > { %v1945_v43 = vpop.permute.xlu1 %1944  ;;  %v1943_v44 = vpop.permute.xlu0 %1942 }
 0xbe7   : > { %1952 = vrot.lane.b32.xlu0 %v1945_v43, %s3686_s19  ;;  %1950 = vrot.lane.b32.xlu1 %v1943_v44, %s3686_s19 }
 0xbea   : > { %v1947_v48 = vpop.permute.xlu1 %1946  ;;  %v1949_v49 = vpop.permute.xlu0 %1948 }
 0xbeb   : > { %1954 = vrot.lane.b32.xlu1 %v1947_v48, %s3686_s19  ;;  %1783 = vrot.lane.b32.xlu0 %v1781_v45, %s3684_s17 }
 0xbef   : > { %1786 = vrot.lane.b32.xlu1 %v1781_v45, %s3683_s13  ;;  %1789 = vrot.lane.b32.xlu0 %v1781_v45, %s3685_s18 }
 0xbf3   : > { %2105 = vrot.lane.b32.xlu1 %v2103_v25, %s4401_s12 }
 0xc59   : > { %v1951_v50 = vpop.permute.xlu1 %1950  ;;  %v1953_v51 = vpop.permute.xlu0 %1952 }
 0xc5a   : > { %v1960_v52 = vcombine.low %v1949_v49, %v1953_v51  ;;  %v1961_v53 = vcombine.high %v1949_v49, %v1953_v51 }
 0xc5c   : > { %v1968_v60 = vrot.slane %v1960_v52, %v3851_v34  ;;  %v1975_v61 = vrot.slane %v1961_v53, %v3851_v34 }
 0xc5d   : > { %v1955_v54 = vpop.permute.xlu1 %1954  ;;  %v1784_v57 = vpop.permute.xlu0 %1783 }
 0xc5e   : > { %v1976_v58 = vcombine.low %v1951_v50, %v1955_v54  ;;  %v1977_v59 = vcombine.high %v1951_v50, %v1955_v54 }
 0xc60   : > { %v1984_v47 = vrot.slane %v1976_v58, %v3851_v34  ;;  %v1991_v62 = vrot.slane %v1977_v59, %v3851_v34 }
 0xc61   : > { %v1787_v23 = vpop.permute.xlu1 %1786  ;;  %v1790_v63 = vpop.permute.xlu0 %1789 }
 0xc62   : > { %v1992_v0 = vcombine.low %v1968_v60, %v1984_v47  ;;  %v1993_v1 = vcombine.high %v1968_v60, %v1984_v47  ;;  %v2008_v3 = vcombine.low %v1975_v61, %v1991_v62  ;;  %v2009_v7 = vcombine.high %v1975_v61, %v1991_v62 }
 0xc63   : > { %v1792_v9 = vcombine.low %v1781_v45, %v1787_v23  ;;  %v1793_v10 = vcombine.high %v1781_v45, %v1787_v23  ;;  %v1808_v12 = vcombine.low %v1784_v57, %v1790_v63  ;;  %v1809_v13 = vcombine.high %v1784_v57, %v1790_v63 }
 0xc64   : > { %v2000_v14 = vrot.slane %v1992_v0, %v3854_v41  ;;  %v2007_v15 = vrot.slane %v1993_v1, %v3854_v41  ;;  %v2016_v5 = vrot.slane %v2008_v3, %v3854_v41  ;;  %v2023_v17 = vrot.slane %v2009_v7, %v3854_v41 }
 0xc65   : > { %v1800_v56 = vrot.slane %v1792_v9, %v3851_v34  ;;  %v1807_v19 = vrot.slane %v1793_v10, %v3851_v34  ;;  %v1816_v20 = vrot.slane %v1808_v12, %v3851_v34  ;;  %v1823_v21 = vrot.slane %v1809_v13, %v3851_v34  ;;  %v2106_v8 = vpop.permute.xlu1 %2105 }
 0xc66   : > { %v2028_v24 = vcombine.low %v2000_v14, %v2007_v15  ;;  %v3242_v26 = vcombine.high %v2000_v14, %v2007_v15  ;;  %v2044_v27 = vcombine.low %v2016_v5, %v2023_v17  ;;  %v3243_v28 = vcombine.high %v2016_v5, %v2023_v17 }
 0xc67   : > { %v1824_v29 = vcombine.low %v1800_v56, %v1816_v20  ;;  %v1825_v30 = vcombine.high %v1800_v56, %v1816_v20  ;;  %v1840_v32 = vcombine.low %v1807_v19, %v1823_v21  ;;  %v1841_v33 = vcombine.high %v1807_v19, %v1823_v21 }
 0xc68   : > { %v2035_v11 = vrot.slane %v2028_v24, %v3851_v34  ;;  %v2043_v36 = vrot.slane %v3242_v26, %v3851_v34  ;;  %v2051_v37 = vrot.slane %v2044_v27, %v3851_v34  ;;  %v2059_v38 = vrot.slane %v3243_v28, %v3851_v34 }
 0xc69   : > { %v1832_v42 = vrot.slane %v1824_v29, %v3854_v41  ;;  %v1839_v43 = vrot.slane %v1825_v30, %v3854_v41  ;;  %v1848_v44 = vrot.slane %v1840_v32, %v3854_v41  ;;  %v1855_v45 = vrot.slane %v1841_v33, %v3854_v41 }
 0xc6a   : > { %v4142_v48 = vadd.f32 %v2106_v8, %v4101_v35  ;;  %v2060_v25 = vcombine.low %v2035_v11, %v2043_v36  ;;  %v2076_v49 = vcombine.low %v2051_v37, %v2059_v38  ;;  %v2061_v50 = vcombine.high %v2035_v11, %v2043_v36 }
 0xc6b   : > { %v1860_v51 = vcombine.low %v1832_v42, %v1839_v43  ;;  %v3240_v52 = vcombine.high %v1832_v42, %v1839_v43  ;;  %v1876_v53 = vcombine.low %v1848_v44, %v1855_v45  ;;  %v3241_v54 = vcombine.high %v1848_v44, %v1855_v45 }
 0xc6c   : > { %2110 = vrot.lane.b32.xlu1 %v4142_v48, %s3684_s17  ;;  %2112 = vrot.lane.b32.xlu0 %v4142_v48, %s3683_s13  ;;  %v2068_v57 = vrot.slane %v2060_v25, %v3854_v41  ;;  %v2084_v58 = vrot.slane %v2076_v49, %v3854_v41  ;;  %v2075_v23 = vrot.slane %v2061_v50, %v3854_v41  ;;  %s3270_s17 = sshll.u32 %s3760_s9, 7  ;;  %s3693_s9 = smov [#allocation2]  }
 0xc6d   : > { %v1867_v35 = vrot.slane %v1860_v51, %v3851_v34  ;;  %v1875_v59 = vrot.slane %v3240_v52, %v3851_v34  ;;  %v1883_v60 = vrot.slane %v1876_v53, %v3851_v34  ;;  %v1891_v61 = vrot.slane %v3241_v54, %v3851_v34  ;;  %s3620_s22 = sshll.u32 %s3693_s9, 4  ;;  %s3621_s22 = int_to_ptr.vmem [resolvable:$false] %s3620_s22 }
 0xc6e   : > { %v2092_v47 = vcombine.low %v2068_v57, %v2084_v58  ;;  %v2093_v62 = vcombine.high %v2068_v57, %v2084_v58  ;;  %v2077_v63 = vcombine.high %v2051_v37, %v2059_v38 }
 0xc6f   : > { %v1892_v0 = vcombine.low %v1867_v35, %v1875_v59  ;;  %v1908_v1 = vcombine.low %v1883_v60, %v1891_v61  ;;  %v1893_v17 = vcombine.high %v1867_v35, %v1875_v59  ;;  %v1909_v56 = vcombine.high %v1883_v60, %v1891_v61 }
 0xc70   : > { %2114 = vrot.lane.b32.xlu1 %v4142_v48, %s3685_s18  ;;  %v2096_v3 = vpack.c.bf16 %v2092_v47, %v2092_v47  ;;  %v2097_v7 = vpack.c.bf16 %v2093_v62, %v2093_v62  ;;  %v2091_v9 = vrot.slane %v2077_v63, %v3854_v41  ;;  %s296_s18 = scalar_lea.vmem [#allocation2], %s3180_s24  ;;  %s3622_s24 = scalar_lea.vmem %s3621_s22, 256 }
 0xc71   : > { %v1900_v10 = vrot.slane %v1892_v0, %v3854_v41  ;;  %v1916_v12 = vrot.slane %v1908_v1, %v3854_v41  ;;  %v1907_v28 = vrot.slane %v1893_v17, %v3854_v41  ;;  %v1923_v29 = vrot.slane %v1909_v56, %v3854_v41  ;;  %s3117_s19 = sshll.u32 %s296_s18, 4  ;;  %s4344_s19 = int_to_ptr.vmem [resolvable:$true] %s3117_s19 }
 0xc72   : > { %v2272_v13 = vsel %vm875_vm2, %v2096_v3, 0  ;;  %v2318_v14 = vsel %vm875_vm2, %v2097_v7, 0  ;;  %v2094_v15 = vcombine.low %v2075_v23, %v2091_v9  ;;  %v2095_v5 = vcombine.high %v2075_v23, %v2091_v9  ;;  %s3616_s21 = scalar_lea.vmem %s4344_s19, 128  ;;  %p3623_p0 = scmp.lt.s32.totalorder %s4344_s19, %s3621_s22 }
 0xc73   : > { %3426 = vmatpush3.bf16.xpose.msra.mxu0 %v2272_v13  ;;  %3432 = vmatpush3.bf16.xpose.msra.mxu1 %v2318_v14  ;;  %v1924_v19 = vcombine.low %v1900_v10, %v1916_v12  ;;  %v1925_v20 = vcombine.high %v1900_v10, %v1916_v12  ;;  %v1926_v33 = vcombine.low %v1907_v28, %v1923_v29  ;;  %p3617_p11 = scmp.ne.s32.totalorder %s4344_s19, %s3616_s21  ;;  %p3624_p1 = scmp.lt.s32.totalorder %s3622_s24, %s3616_s21 }
 0xc74   : > { %3437 = vmatprep.subr.bf16.mxu0 %v3680_v2  ;;  %3443 = vmatprep.subr.bf16.mxu1 %v3680_v2  ;;  %v2098_v21 = vpack.c.bf16 %v2094_v15, %v2094_v15  ;;  %v2099_v24 = vpack.c.bf16 %v2095_v5, %v2095_v5  ;;  %v1927_v8 = vcombine.high %v1907_v28, %v1923_v29 }
 0xc75   : > { %v1928_v26 = vpack.c.bf16 %v1924_v19, %v1924_v19  ;;  %v1929_v27 = vpack.c.bf16 %v1925_v20, %v1925_v20  ;;  %v1930_v11 = vpack.c.bf16 %v1926_v33, %v1926_v33  ;;  %p3618_p12 = pnand %p3617_p11, %p3777_p5  ;;  %p3625_p2 = por %p3624_p1, %p3623_p0 }
 0xc76   : > { %v2364_v30 = vsel %vm875_vm2, %v2098_v21, 0  ;;  %v2410_v32 = vsel %vm875_vm2, %v2099_v24, 0  ;;  %v1931_v36 = vpack.c.bf16 %v1927_v8, %v1927_v8 }
 0xc77   : > { %p3619_p13 = pneg %p3618_p12 }
 0xc79   : > { %p3626_p3 = pnand %p3625_p2, %p3619_p13 }
 0xc7a   : > { %3428 = vmatmul.mubr.msk.bf16.vlgmr.msra.gmra.mrb[24].mxu0 %vm875_vm2, %v1928_v26  ;;  %3434 = vmatmul.mubr.msk.bf16.vlgmr.msra.gmra.mrb[28].mxu1 %vm875_vm2, %v1929_v27 }
 0xc7b   : > { %3438 = vmatpush3.bf16.xpose.msra.mxu0 %v2364_v30  ;;  %3444 = vmatpush3.bf16.xpose.msra.mxu1 %v2410_v32 }
 0xc7c   : > { %3439 = vmatprep.mubr.msk.bf16.mxu0 %vm3681_vm0, %v3680_v2  ;;  %3445 = vmatprep.mubr.msk.bf16.mxu1 %vm3681_vm0, %v3680_v2 }
 0xc7d   : > { %3449 = vmatprep.subr.bf16.mxu0 %v3680_v2  ;;  %3455 = vmatprep.subr.bf16.mxu1 %v3680_v2 }
 0xc82   : > { %3440 = vmatmul.mubr.msk.bf16.vlgmr.msra.gmra.mrb[28].mxu0 %vm875_vm2, %v1930_v11  ;;  %3446 = vmatmul.mubr.msk.bf16.vlgmr.msra.gmra.mrb[32].mxu1 %vm875_vm2, %v1931_v36 }
 0xc83   : > { %3451 = vmatprep.mubr.msk.bf16.mxu0 %vm3681_vm0, %v3680_v2  ;;  %3457 = vmatprep.mubr.msk.bf16.mxu1 %vm3681_vm0, %v3680_v2 }
 0xcde   : > { %v2111_v62 = vpop.permute.xlu1 %2110  ;;  %v2113_v23 = vpop.permute.xlu0 %2112 }
 0xce2   : > { %v2115_v63 = vpop.permute.xlu1 %2114 }
 0xd4d   : > { %v2308_v37 = vpop.f32.mrb[24].mxu0  ;;  %v2354_v38 = vpop.f32.mrb[28].mxu1 }
 0xd4e   : > { %v3429_v42 = vpop.f32.mrb[25].mxu0  ;;  %v3435_v43 = vpop.f32.mrb[29].mxu1  ;;  %v2452_v44 = vsel %vm875_vm2, %v2308_v37, -inf  ;;  %v2455_v45 = vsel %vm875_vm2, %v2354_v38, -inf }
 0xd4f   : > { %2453 = vmax.xlane.f32.xlu0 %v2452_v44  ;;  %v2311_v25 = vpop.f32.mrb[26].mxu0  ;;  %2456 = vmax.xlane.f32.xlu1 %v2455_v45  ;;  %v2357_v49 = vpop.f32.mrb[30].mxu1 }
 0xd50   : > { %v3430_v50 = vpop.f32.mrb[27].mxu0  ;;  %v3436_v51 = vpop.f32.mrb[31].mxu1 }
 0xd55   : > { %v2400_v52 = vpop.f32.mrb[28].mxu0  ;;  %v2446_v53 = vpop.f32.mrb[32].mxu1 }
 0xd56   : > { %v3441_v54 = vpop.f32.mrb[29].mxu0  ;;  %v3447_v57 = vpop.f32.mrb[33].mxu1  ;;  %v2458_v58 = vsel %vm875_vm2, %v2400_v52, -inf  ;;  %v2461_v47 = vsel %vm875_vm2, %v2446_v53, -inf }
 0xd57   : > { %2459 = vmax.xlane.f32.xlu0 %v2458_v58  ;;  %v2403_v35 = vpop.f32.mrb[30].mxu0  ;;  %v2449_v59 = vpop.f32.mrb[34].mxu1 }
 0xd58   : > { %v3442_v60 = vpop.f32.mrb[31].mxu0  ;;  %v3448_v61 = vpop.f32.mrb[35].mxu1 }
 0xd5b   : > { %2462 = vmax.xlane.f32.xlu0 %v2461_v47 }
 0xd60   : > { %2118 = vrot.lane.b32.xlu1 %v2111_v62, %s4401_s12 }
 0xd71   : > { %2116 = vrot.lane.b32.xlu0 %v4142_v48, %s4401_s12 }
 0xddc   : > { %v2454_v0 = vpop.xlane.xlu0 %2453  ;;  %v2457_v1 = vpop.xlane.xlu1 %2456 }
 0xddd   : > { %v2464_v3 = vsub.f32 %v2308_v37, %v2454_v0  ;;  %v2465_v7 = vsub.f32 %v2354_v38, %v2457_v1 }
 0xddf   : > { %v2468_v9 = vmul.f32 1.442695, %v2464_v3  ;;  %v2470_v10 = vmul.f32 1.442695, %v2465_v7 }
 0xde0   : > { %v2119_v28 = vpop.permute.xlu1 %2118 }
 0xde1   : > { %3593 = vpow2.f32 %v2468_v9 }
 0xde2   : > { %3595 = vpow2.f32 %v2470_v10 }
 0xde4   : > { %v2460_v15 = vpop.xlane.xlu0 %2459 }
 0xde5   : > { %v2466_v17 = vsub.f32 %v2400_v52, %v2460_v15 }
 0xde7   : > { %v2472_v19 = vmul.f32 1.442695, %v2466_v17 }
 0xde8   : > { %v2463_v5 = vpop.xlane.xlu0 %2462 }
 0xde9   : > { %v2467_v56 = vsub.f32 %v2446_v53, %v2463_v5  ;;  %3597 = vpow2.f32 %v2472_v19 }
 0xdeb   : > { %v4189_v12 = vpop.eup %3593  ;;  %v2474_v20 = vmul.f32 1.442695, %v2467_v56 }
 0xdec   : > { %v4191_v13 = vpop.eup %3595  ;;  %v2476_v14 = vsel %vm875_vm2, %v4189_v12, 0.0  ;;  %v2117_v29 = vpop.permute.xlu0 %2116 }
 0xded   : > { %2477 = vadd.xlane.f32.xlu1 %v2476_v14  ;;  %v2479_v48 = vsel %vm875_vm2, %v4191_v13, 0.0  ;;  %3599 = vpow2.f32 %v2474_v20 }
 0xdee   : > { %2480 = vadd.xlane.f32.xlu0 %v2479_v48 }
 0xdf3   : > { %v4199_v21 = vpop.eup %3597 }
 0xdf4   : > { %v2482_v26 = vsel %vm875_vm2, %v4199_v21, 0.0 }
 0xdf7   : > { %v4201_v24 = vpop.eup %3599 }
 0xdf8   : > { %v2485_v27 = vsel %vm875_vm2, %v4201_v24, 0.0 }
 0xdfe   : > { %2120 = vrot.lane.b32.xlu1 %v2113_v23, %s4401_s12 }
 0xe04   : > { %2122 = vrot.lane.b32.xlu0 %v2115_v63, %s4401_s12 }
 0xe22   : > { %2483 = vadd.xlane.f32.xlu1 %v2482_v26 }
 0xe23   : > { %2486 = vadd.xlane.f32.xlu0 %v2485_v27 }
 0xe7a   : > { %v2478_v30 = vpop.xlane.xlu1 %2477 }
 0xe7b   : > { %v2481_v32 = vpop.xlane.xlu0 %2480  ;;  %3601 = vrcp.f32 %v2478_v30 }
 0xe7c   : > { %3603 = vrcp.f32 %v2481_v32 }
 0xe7e   : > { %v2121_v33 = vpop.permute.xlu1 %2120 }
 0xe7f   : > { %v2128_v8 = vcombine.low %v2117_v29, %v2121_v33  ;;  %v2129_v11 = vcombine.high %v2117_v29, %v2121_v33  ;;  %v2123_v36 = vpop.permute.xlu0 %2122 }
 0xe80   : > { %v2144_v37 = vcombine.low %v2119_v28, %v2123_v36  ;;  %v2145_v38 = vcombine.high %v2119_v28, %v2123_v36 }
 0xe81   : > { %v2136_v42 = vrot.slane %v2128_v8, %v3851_v34  ;;  %v2143_v43 = vrot.slane %v2129_v11, %v3851_v34 }
 0xe82   : > { %v2152_v44 = vrot.slane %v2144_v37, %v3851_v34  ;;  %v2159_v45 = vrot.slane %v2145_v38, %v3851_v34 }
 0xe84   : > { %v2160_v25 = vcombine.low %v2136_v42, %v2152_v44  ;;  %v2161_v49 = vcombine.high %v2136_v42, %v2152_v44  ;;  %v2176_v50 = vcombine.low %v2143_v43, %v2159_v45  ;;  %v2177_v51 = vcombine.high %v2143_v43, %v2159_v45 }
 0xe85   : > { %v3602_v10 = vpop.eup %3601 }
 0xe86   : > { %v2168_v52 = vrot.slane %v2160_v25, %v3854_v41  ;;  %v2175_v53 = vrot.slane %v2161_v49, %v3854_v41  ;;  %v2184_v54 = vrot.slane %v2176_v50, %v3854_v41  ;;  %v2191_v57 = vrot.slane %v2177_v51, %v3854_v41  ;;  %v3604_v15 = vpop.eup %3603 }
 0xe87   : > { %v2492_v20 = vmul.f32 %v3602_v10, %v4189_v12  ;;  %v2493_v26 = vmul.f32 %v3604_v15, %v4191_v13 }
 0xe88   : > { %v2196_v58 = vcombine.low %v2168_v52, %v2175_v53  ;;  %v3244_v35 = vcombine.high %v2168_v52, %v2175_v53  ;;  %v2212_v59 = vcombine.low %v2184_v54, %v2191_v57  ;;  %v3245_v60 = vcombine.high %v2184_v54, %v2191_v57 }
 0xe89   : > { %v2496_v8 = vpack.c.bf16 %v2492_v20, %v2492_v20  ;;  %v2497_v11 = vpack.c.bf16 %v2493_v26, %v2493_v26 }
 0xe8a   : > { %v2203_v61 = vrot.slane %v2196_v58, %v3851_v34  ;;  %v2211_v47 = vrot.slane %v3244_v35, %v3851_v34  ;;  %v2219_v62 = vrot.slane %v2212_v59, %v3851_v34  ;;  %v2227_v23 = vrot.slane %v3245_v60, %v3851_v34 }
 0xe8c   : > { %v2228_v63 = vcombine.low %v2203_v61, %v2211_v47  ;;  %v2229_v0 = vcombine.high %v2203_v61, %v2211_v47  ;;  %v2244_v1 = vcombine.low %v2219_v62, %v2227_v23  ;;  %v2245_v3 = vcombine.high %v2219_v62, %v2227_v23 }
 0xe8e   : > { %v2236_v7 = vrot.slane %v2228_v63, %v3854_v41  ;;  %v2243_v9 = vrot.slane %v2229_v0, %v3854_v41  ;;  %v2252_v14 = vrot.slane %v2244_v1, %v3854_v41  ;;  %v2259_v48 = vrot.slane %v2245_v3, %v3854_v41 }
 0xe90   : > { %v2260_v5 = vcombine.low %v2236_v7, %v2252_v14  ;;  %v2261_v17 = vcombine.high %v2236_v7, %v2252_v14  ;;  %v2262_v56 = vcombine.low %v2243_v9, %v2259_v48  ;;  %v2263_v19 = vcombine.high %v2243_v9, %v2259_v48 }
 0xe92   : > { %v2264_v27 = vpack.c.bf16 %v2260_v5, %v2260_v5  ;;  %v2265_v28 = vpack.c.bf16 %v2261_v17, %v2261_v17  ;;  %v2266_v32 = vpack.c.bf16 %v2262_v56, %v2262_v56  ;;  %v2267_v33 = vpack.c.bf16 %v2263_v19, %v2263_v19  ;;  %v3565_v17 = vld [vmem:[%s4387_s2 + $0x10] sm:$0xff]  }
 0xe94   : > { %v2504_v29 = vsel %vm1111_vm3, %v2264_v27, 0  ;;  %v2550_v30 = vsel %vm1111_vm3, %v2265_v28, 0  ;;  %v2596_v12 = vsel %vm1111_vm3, %v2266_v32, 0  ;;  %v2642_v13 = vsel %vm1111_vm3, %v2267_v33, 0 }
 0xe95   : > { %3450 = vmatpush3.bf16.msra.mxu0 %v2504_v29  ;;  %3456 = vmatpush3.bf16.msra.mxu1 %v2550_v30 }
 0xe96   : > { %3461 = vmatprep.subr.bf16.mxu0 %v3680_v2  ;;  %3467 = vmatprep.subr.bf16.mxu1 %v3680_v2 }
 0xe98   : > { %3452 = vmatmul.mubr.msk.bf16.vlgmr.msra.gmra.mrb[32].mxu0 %vm875_vm2, %v2496_v8  ;;  %3458 = vmatmul.mubr.msk.bf16.vlgmr.msra.gmra.mrb[36].mxu1 %vm875_vm2, %v2497_v11 }
 0xe99   : > { %3462 = vmatpush3.bf16.msra.mxu0 %v2596_v12  ;;  %3468 = vmatpush3.bf16.msra.mxu1 %v2642_v13  ;;  %v3566_v12 = vld [vmem:[%s4387_s2 + $0x18] sm:$0xff]  }
 0xe9a   : > { %3463 = vmatprep.mubr.msk.bf16.mxu0 %vm3681_vm0, %v3680_v2  ;;  %3469 = vmatprep.mubr.msk.bf16.mxu1 %vm3681_vm0, %v3680_v2 }
 0xe9b   : > { %3473 = vmatprep.subr.bf16.mxu0 %v3680_v2  ;;  %3481 = vmatprep.subr.bf16.mxu1 %v3680_v2 }
 0xeaf   : > { %v2484_v36 = vpop.xlane.xlu1 %2483 }
 0xeb0   : > { %3605 = vrcp.f32 %v2484_v36  ;;  %v2487_v37 = vpop.xlane.xlu0 %2486 }
 0xeb1   : > { %3607 = vrcp.f32 %v2487_v37 }
 0xeba   : > { %v3606_v38 = vpop.eup %3605 }
 0xebb   : > { %v3608_v42 = vpop.eup %3607  ;;  %v2494_v43 = vmul.f32 %v3606_v38, %v4199_v21 }
 0xebc   : > { %v2495_v44 = vmul.f32 %v3608_v42, %v4201_v24 }
 0xebd   : > { %v2498_v45 = vpack.c.bf16 %v2494_v43, %v2494_v43 }
 0xebe   : > { %v2499_v25 = vpack.c.bf16 %v2495_v44, %v2495_v44 }
 0xebf   : > { %3464 = vmatmul.mubr.msk.bf16.vlgmr.msra.gmra.mrb[36].mxu0 %vm875_vm2, %v2498_v45 }
 0xec0   : > { %3470 = vmatmul.mubr.msk.bf16.vlgmr.msra.gmra.mrb[40].mxu1 %vm875_vm2, %v2499_v25  ;;  %3477 = vmatprep.mubr.msk.bf16.mxu0 %vm3681_vm0, %v3680_v2 }
 0xec1   : > { %3485 = vmatprep.mubr.msk.bf16.mxu1 %vm3681_vm0, %v3680_v2  ;;  %3474 = vmatpush3.bf16.msra.mxu0 %v3565_v17 }
 0xec2   : > { %3475 = vmatprep.subr.bf16.mxu0 %v3680_v2 }
 0xec5   : > { %3476 = vmatpush3.bf16.msra.mxu0 %v3566_v12 }
 0xec6   : > { %3489 = vmatprep.subr.bf16.mxu0 %v3680_v2 }
 0xf6b   : > { %v2540_v49 = vpop.f32.mrb[32].mxu0  ;;  %v2586_v50 = vpop.f32.mrb[36].mxu1 }
 0xf6c   : > { %v3453_v51 = vpop.f32.mrb[33].mxu0  ;;  %v3459_v52 = vpop.f32.mrb[37].mxu1 }
 0xf6d   : > { %v2543_v53 = vpop.f32.mrb[34].mxu0  ;;  %v2589_v21 = vpop.f32.mrb[38].mxu1 }
 0xf6e   : > { %v3454_v54 = vpop.f32.mrb[35].mxu0  ;;  %v3460_v24 = vpop.f32.mrb[39].mxu1 }
 0xf92   : > { %v2632_v57 = vpop.f32.mrb[36].mxu0 }
 0xf93   : > { %v2684_v58 = vcombine.low %v2540_v49, %v2632_v57  ;;  %v2685_v35 = vcombine.high %v2540_v49, %v2632_v57  ;;  %v2678_v59 = vpop.f32.mrb[40].mxu1  ;;  %v3465_v60 = vpop.f32.mrb[37].mxu0  ;;  %v2839_v57 = vrot.slane %v4079_v55, %v1449_v18  ;;  %v3567_v18 = vld [vmem:[%s4388_s3 + $0x10] sm:$0xff]  }
 0xf94   : > { %v2700_v61 = vcombine.low %v2586_v50, %v2678_v59  ;;  %v2701_v47 = vcombine.high %v2586_v50, %v2678_v59  ;;  %v3471_v62 = vpop.f32.mrb[41].mxu1  ;;  %v2635_v23 = vpop.f32.mrb[38].mxu0  ;;  %3482 = vmatpush3.bf16.msra.mxu1 %v3567_v18 }
 0xf95   : > { %v2692_v63 = vrot.slane %v2684_v58, %v3851_v34  ;;  %v2699_v0 = vrot.slane %v2685_v35, %v3851_v34  ;;  %v2681_v1 = vpop.f32.mrb[42].mxu1  ;;  %v3466_v3 = vpop.f32.mrb[39].mxu0  ;;  %3483 = vmatprep.subr.bf16.mxu1 %v3680_v2 }
 0xf96   : > { %v2708_v7 = vrot.slane %v2700_v61, %v3851_v34  ;;  %v2715_v9 = vrot.slane %v2701_v47, %v3851_v34  ;;  %v3472_v10 = vpop.f32.mrb[43].mxu1 }
 0xf98   : > { %v2716_v14 = vcombine.low %v2692_v63, %v2708_v7  ;;  %v2717_v48 = vcombine.high %v2692_v63, %v2708_v7  ;;  %v2732_v15 = vcombine.low %v2699_v0, %v2715_v9  ;;  %v2733_v5 = vcombine.high %v2699_v0, %v2715_v9  ;;  %v3568_v7 = vld [vmem:[%s4388_s3 + $0x18] sm:$0xff]   ;;  %v3570_v9 = vld [vmem:[%s4389_s4 + $0x28] sm:$0xff]  }
 0xf99   : > { %3484 = vmatpush3.bf16.msra.mxu1 %v3568_v7 }
 0xf9a   : > { %v2724_v56 = vrot.slane %v2716_v14, %v3854_v41  ;;  %v2731_v19 = vrot.slane %v2717_v48, %v3854_v41  ;;  %v2740_v20 = vrot.slane %v2732_v15, %v3854_v41  ;;  %v2747_v26 = vrot.slane %v2733_v5, %v3854_v41 }
 0xf9b   : > { %v2912_v15 = vrot.slane %v4079_v55, %v1523_v39  ;;  %v3572_v39 = vld [vmem:[%s4389_s4 + $0x38] sm:$0xff]  }
 0xf9c   : > { %v2752_v27 = vcombine.low %v2724_v56, %v2731_v19  ;;  %v3254_v28 = vcombine.high %v2724_v56, %v2731_v19  ;;  %v2768_v29 = vcombine.low %v2740_v20, %v2747_v26  ;;  %v3255_v30 = vcombine.high %v2740_v20, %v2747_v26 }
 0xf9d   : > { %v2917_v56 = vrot.slane %v4079_v55, %v1528_v40  ;;  %v3259_v40 = vld [vmem:[%s4391_s6 + $0x1] ss:$0 sm:$0xff] }
 0xf9e   : > { %v2759_v32 = vrot.slane %v2752_v27, %v3851_v34  ;;  %v2767_v33 = vrot.slane %v3254_v28, %v3851_v34  ;;  %v2775_v8 = vrot.slane %v2768_v29, %v3851_v34  ;;  %v2783_v11 = vrot.slane %v3255_v30, %v3851_v34  ;;  %v3571_v27 = vld [vmem:[%s4389_s4 + $0x30] sm:$0xff]  }
 0xfa0   : > { %v2785_v13 = vcombine.high %v2759_v32, %v2767_v33  ;;  %v2801_v36 = vcombine.high %v2775_v8, %v2783_v11  ;;  %v2784_v37 = vcombine.low %v2759_v32, %v2767_v33  ;;  %v2800_v38 = vcombine.low %v2775_v8, %v2783_v11 }
 0xfa2   : > { %v2799_v42 = vrot.slane %v2785_v13, %v3854_v41  ;;  %v2815_v43 = vrot.slane %v2801_v36, %v3854_v41  ;;  %v2792_v44 = vrot.slane %v2784_v37, %v3854_v41  ;;  %v2808_v45 = vrot.slane %v2800_v38, %v3854_v41 }
 0xfa4   : > { %v2818_v34 = vcombine.low %v2799_v42, %v2815_v43  ;;  %v2817_v25 = vcombine.high %v2792_v44, %v2808_v45  ;;  %v2819_v49 = vcombine.high %v2799_v42, %v2815_v43  ;;  %v2816_v50 = vcombine.low %v2792_v44, %v2808_v45 }
 0xfa6   : > { %2825 = vrot.lane.b32.xlu1 %v2818_v34, %s4402_s20  ;;  %2821 = vrot.lane.b32.xlu0 %v2817_v25, %s4403_s25 }
 0xfaa   : > { %2829 = vrot.lane.b32.xlu1 %v2819_v49, %s4404_s26  ;;  %s4342_s26 = scalar_lea.hbm %s4393_s8, %s3270_s17 }
0x1018   : > { %v2826_v51 = vpop.permute.xlu1 %2825  ;;  %v2822_v52 = vpop.permute.xlu0 %2821 }
0x1019   : > { %v2832_v53 = vsel %vm875_vm2, %v2816_v50, %v2822_v52 }
0x101a   : > { %v2833_v54 = vsel %vm1442_vm4, %v2832_v53, %v2826_v51 }
0x101c   : > { %v2830_v21 = vpop.permute.xlu1 %2829 }
0x101d   : > { %v2834_v24 = vsel %vm1444_vm5, %v2833_v54, %v2830_v21  ;;  %v3268_v54 = vld [vmem:[%s4390_s5 + $0x18] ss:$0 sm:$0xff] }
0x101e   : > { %v2835_v41 = vpack.c.bf16 %v2834_v24, %v2834_v24 }
0x1020   : > { %3478 = vmatmul.mubr.msk.bf16.vlgmr.msra.gmra.mrb[40].mxu0 %vm339_vm1, %v2835_v41 }
0x1021   : > { %3497 = vmatprep.mubr.msk.bf16.mxu0 %vm3681_vm0, %v3680_v2 }
0x10f3   : > { %v2889_v58 = vpop.f32.mrb[40].mxu0 }
0x10f4   : > { %v2890_v35 = vadd.f32 %v2889_v58, %v2839_v57  ;;  %v3479_v59 = vpop.f32.mrb[41].mxu0 }
0x10f5   : > { %v2892_v60 = vpop.f32.mrb[42].mxu0 }
0x10f6   : > { %v3480_v61 = vpop.f32.mrb[43].mxu0  ;;  %v2895_v47 = vadd.f32 %v2890_v35, %v4094_v31  ;;  %v3569_v31 = vld [vmem:[%s4389_s4 + $0x20] sm:$0xff]  }
0x10f7   : > { %3490 = vmatpush3.bf16.msra.mxu0 %v3569_v31 }
0x10f8   : > { %v2896_v62 = vsel %vm339_vm1, %v2895_v47, 0.0  ;;  %3491 = vmatprep.subr.bf16.mxu0 %v3680_v2 }
0x10f9   : > { %2897 = vadd.xlane.f32.xlu0 %v2896_v62 }
0x10fb   : > { %3492 = vmatpush3.bf16.msra.mxu0 %v3570_v9 }
0x10fc   : > { %3493 = vmatprep.subr.bf16.mxu0 %v3680_v2 }
0x10ff   : > { %3494 = vmatpush3.bf16.msra.mxu0 %v3571_v27 }
0x1100   : > { %3495 = vmatprep.subr.bf16.mxu0 %v3680_v2  ;;  %v2986_v2 = vrot.slane %v4079_v55, %v1597_v46  ;;  %v3071_v46 = vrot.slane %v4079_v55, %v1683_v22 }
0x1103   : > { %3496 = vmatpush3.bf16.msra.mxu0 %v3572_v39 }
0x1186   : > { %v2898_v23 = vpop.xlane.xlu0 %2897 }
0x1187   : > { %v2899_v63 = vmul.f32 0.03125, %v2898_v23 }
0x1189   : > { %v2900_v0 = vsub.f32 %v2895_v47, %v2899_v63  ;;  %v3078_v47 = vld [vmem:[%s4392_s7] sm:$0x3] }
0x118a   : > { %v3095_v62 = vrot.slane %v3078_v47, %v3834_v16 }
0x118b   : > { %v2901_v1 = vmul.f32 %v2900_v0, %v2900_v0 }
0x118d   : > { %v2902_v3 = vsel %vm339_vm1, %v2901_v1, 0.0 }
0x118e   : > { %2903 = vadd.xlane.f32.xlu1 %v2902_v3 }
0x121b   : > { %v2904_v10 = vpop.xlane.xlu1 %2903 }
0x121c   : > { %v2905_v14 = vmul.f32 0.03125, %v2904_v10 }
0x121e   : > { %v2906_v48 = vadd.f32 1e-05, %v2905_v14 }
0x1220   : > { %3609 = vrsqrt.f32 %v2906_v48 }
0x122a   : > { %v3610_v5 = vpop.eup %3609 }
0x122b   : > { %v2908_v17 = vmul.f32 %v3610_v5, %v2900_v0  ;;  %v3100_v0 = vrot.slane %v3078_v47, %v3810_v6 }
0x122d   : > { %v2913_v19 = vmul.f32 %v2912_v15, %v2908_v17 }
0x122f   : > { %v2918_v20 = vadd.f32 %v2917_v56, %v2913_v19 }
0x1231   : > { %v2919_v26 = vpack.c.bf16 %v2918_v20, %v2918_v20 }
0x1233   : > { %3486 = vmatmul.mubr.msk.bf16.vlgmr.msra.gmra.mrb[44].mxu1 %vm339_vm1, %v2919_v26 }
0x1306   : > { %v2975_v28 = vpop.f32.mrb[44].mxu1 }
0x1307   : > { %v2976_v29 = vadd.f32 %v3259_v40, %v2975_v28  ;;  %v3487_v30 = vpop.f32.mrb[45].mxu1 }
0x1308   : > { %v2978_v32 = vpop.f32.mrb[46].mxu1 }
0x1309   : > { %v2981_v33 = vmax.f32 %v2976_v29, 0.0  ;;  %v3488_v8 = vpop.f32.mrb[47].mxu1 }
0x130b   : > { %v2982_v11 = vpack.c.bf16 %v2981_v33, %v2981_v33 }
0x130d   : > { %3498 = vmatmul.mubr.msk.bf16.vlgmr.msra.gmra.mrb[44].mxu0 %vm1623_vm6, %v2982_v11 }
0x13e0   : > { %v3048_v12 = vpop.f32.mrb[44].mxu0 }
0x13e1   : > { %v3049_v13 = vadd.f32 %v3048_v12, %v2986_v2  ;;  %v3499_v36 = vpop.f32.mrb[45].mxu0 }
0x13e2   : > { %v3051_v37 = vpop.f32.mrb[46].mxu0 }
0x13e3   : > { %v3500_v38 = vpop.f32.mrb[47].mxu0  ;;  %v3054_v42 = vadd.f32 %v3049_v13, %v2918_v20 }
0x13e5   : > { %v3055_v43 = vsel %vm339_vm1, %v3054_v42, 0.0 }
0x13e6   : > { %3056 = vadd.xlane.f32.xlu0 %v3055_v43 }
0x1473   : > { %v3057_v44 = vpop.xlane.xlu0 %3056 }
0x1474   : > { %v3058_v45 = vmul.f32 0.03125, %v3057_v44 }
0x1476   : > { %v3059_v34 = vsub.f32 %v3054_v42, %v3058_v45 }
0x1478   : > { %v3060_v25 = vmul.f32 %v3059_v34, %v3059_v34 }
0x147a   : > { %v3061_v49 = vsel %vm339_vm1, %v3060_v25, 0.0 }
0x147b   : > { %3062 = vadd.xlane.f32.xlu0 %v3061_v49 }
0x1508   : > { %v3063_v50 = vpop.xlane.xlu0 %3062 }
0x1509   : > { %v3064_v51 = vmul.f32 0.03125, %v3063_v50 }
0x150b   : > { %v3065_v52 = vadd.f32 1e-05, %v3064_v51 }
0x150d   : > { %3611 = vrsqrt.f32 %v3065_v52 }
0x1517   : > { %v3612_v53 = vpop.eup %3611 }
0x1518   : > { %v3067_v21 = vmul.f32 %v3612_v53, %v3059_v34 }
0x151a   : > { %v3072_v24 = vmul.f32 %v3071_v46, %v3067_v21 }
0x151c   : > { %v3077_v41 = vadd.f32 %v3268_v54, %v3072_v24 }
0x151e   : > { %v3079_v57 = vsel %vm339_vm1, %v3077_v41, 0.0 }
0x151f   : > { %3080 = vadd.xlane.f32.xlu1 %v3079_v57 }
0x15ac   : > { %v3081_v58 = vpop.xlane.xlu1 %3080 }
0x15ad   : > { %v3082_v35 = vmul.f32 0.03125, %v3081_v58 }
0x15af   : > { %v3083_v59 = vsub.f32 %v3077_v41, %v3082_v35 }
0x15b1   : > { %v3084_v60 = vmul.f32 %v3083_v59, %v3083_v59 }
0x15b3   : > { %v3085_v4 = vsel %vm339_vm1, %v3084_v60, 0.0 }
0x15b4   : > { %3086 = vadd.xlane.f32.xlu0 %v3085_v4 }
0x1641   : > { %v3087_v55 = vpop.xlane.xlu0 %3086 }
0x1642   : > { %v3088_v22 = vmul.f32 0.03125, %v3087_v55 }
0x1644   : > { %v3089_v61 = vadd.f32 1e-05, %v3088_v22 }
0x1646   : > { %3613 = vrsqrt.f32 %v3089_v61 }
0x1650   : > { %v3614_v23 = vpop.eup %3613 }
0x1651   : > { %v3091_v63 = vmul.f32 %v3614_v23, %v3083_v59 }
0x1653   : > { %v3096_v1 = vmul.f32 %v3095_v62, %v3091_v63 }
0x1655   : > { %v3101_v3 = vadd.f32 %v3100_v0, %v3096_v1 }
0x1657   : > { %3102 = vst.msk [vmem:[%s296_s18] sm:$0xff] %vm339_vm1, %v3101_v3 }
0x1658   : > { %3629 = shalt.err (!%p3626_p3)
}
0x1659   : > { %s3630_s23 = scalar_lea.hbm %s4342_s26, 128  ;;  %s3634_s17 = scalar_lea.hbm %s4393_s8, 256 }
0x165a   : > { %p3631_p4 = scmp.ne.s32.totalorder %s4342_s26, %s3630_s23  ;;  %p3635_p9 = scmp.lt.u32.totalorder %s4342_s26, %s4393_s8 }
0x165b   : > { %p3636_p10 = scmp.lt.u32.totalorder %s3634_s17, %s3630_s23  ;;  %p3638_p12 = scmp.lt.u32.totalorder %s3630_s23, %s4342_s26 }
0x165c   : > { %p3632_p7 = pnand %p3631_p4, %p3777_p5 }
0x165d   : > { %p3637_p11 = por %p3636_p10, %p3635_p9 }
0x165e   : > { %p3633_p8 = pneg %p3632_p7 }
0x165f   : > { %p3639_p13 = por %p3638_p12, %p3637_p11 }
0x1661   : > { %p3640_p0 = pnand %p3639_p13, %p3633_p8 }
0x1663   : > { %3643 = shalt.err (!%p3640_p0)
}
0x1664   : > { %3501 = dma.vmem_to_hbm [thread:$0]  (%p3777_p5), %s4344_s19, 128, %s4342_s26, %s3104_s10  }
0x1665 PF: > { %p3507_p1 = scmp.ge.s32.totalorder %s3678_s30, 2  ;;  %s3129_s25 = sand.u32 1, %s3666_s27  }
0x1666   : > { %s3130_s21 = scalar_lea.sflag [#allocation3], %s3129_s25 }
0x1667   : > { %p3504_p2 = pnand %p3507_p1, %p3781_p6 }
0x1669   : > { %3661 = dma.done.wait (!%p3504_p2), %s3130_s21, 128  }
0x166a   : > { %3663 = vsyncadd (!%p3504_p2), %s3130_s21, 4294967168  ;;  %p18_p3 = scmp.ge.s32.totalorder %s3764_s11, 4   ;;  %s4405_s27 = smov %s3670_s28 }
0x166b   : > { %s4406_s28 = smov %s3674_s29  ;;  %s4407_s29 = smov %s3775_s14 }
0x166c   : > { %s4408_s30 = smov %s3764_s11  ;;  %20 = sbr.rel (!%p18_p3) target bundleno = 3 (0x3), region = 93 }
0x1673   :  { %3135 = vsyncpa [#allocation3], 1 }
0x1674   :  { %3137 = vsyncpa [#allocation3 + $0x1], 1 }

</bundles_post_ra>
